<compile_context>
chip_gen: v7x
topology: tpu7x:2x2x1
jax: 0.10.0
libtpu: 0.0.40
codegen_flags: <defaults>
</compile_context>

<pallas_src>
import jax
import jax.numpy as jnp
import numpy as np
from jax.experimental import pallas as pl
from jax.experimental.pallas import tpu as pltpu

_LANE = 128


def _mlp_kernel(x_ref, a0_ref, b0_ref, a1_ref, b1_ref,
                a2_ref, b2_ref, a3_ref, b3_ref, o_ref):
    cdt = a0_ref.dtype  # matmul-input dtype (f32 or bf16); epilogue stays f32
    # weighted_mean: Conv2d(C, C, (1, P)) + BN + ReLU   (BN folded into a0/b0)
    h = jnp.dot(x_ref[...], a0_ref[...], preferred_element_type=jnp.float32) + b0_ref[...]
    h = jnp.maximum(h, 0.0).astype(cdt)
    # conv1: Conv1d(C, 512, 1) + BN + ReLU
    h = jnp.dot(h, a1_ref[...], preferred_element_type=jnp.float32) + b1_ref[...]
    h = jnp.maximum(h, 0.0).astype(cdt)
    # score[0]: Conv1d(512, 256, 1) + BN + ReLU
    h = jnp.dot(h, a2_ref[...], preferred_element_type=jnp.float32) + b2_ref[...]
    h = jnp.maximum(h, 0.0).astype(cdt)
    # score[1]: Conv1d(256, 1, 1) (bias, no BN) + sigmoid  (padded to 128 lanes)
    logits = jnp.dot(h, a3_ref[...], preferred_element_type=jnp.float32) + b3_ref[...]
    e = jnp.exp(-logits)                                  # EUP
    o_ref[...] = pl.reciprocal(1.0 + e, approx=True)      # EUP vrcp (idle slot)


def _pad_to(x, shape):
    return jnp.pad(x, [(0, s - d) for d, s in zip(x.shape, shape)])


def antipodal_predict_batch(gather_feat, params, *, row_tile=128,
                            compute_dtype=jnp.float32):
    B, C, H, P = gather_feat.shape
    a0, b0, a1, b1, a2, b2, a3, b3 = params
    CP = C * P
    H1 = a1.shape[1]            # 512
    H2 = a2.shape[1]            # 256

    rows = B * H
    rows_pad = pl.cdiv(rows, row_tile) * row_tile

    # per-(b,h) feature vector = gather_feat[b, :, h, :] flattened (C-major, then P)
    # TODO(synk): for large B*H, read gather_feat directly in the kernel and do
    # the (C, tile_h, P) -> (tile_h, C*P) swizzle in VMEM instead of this
    # wrapper transpose (saves one HBM round-trip of the activations).
    x = jnp.transpose(gather_feat, (0, 2, 1, 3)).reshape(rows, CP)
    if rows_pad != rows:
        x = jnp.pad(x, ((0, rows_pad - rows), (0, 0)))

    # Zero-pad narrow dims to 128 lanes (exact: padded lanes stay 0 through the
    # ReLU and the corresponding zero weight rows/cols contribute nothing).
    Cpad = max(_LANE, pl.cdiv(C, _LANE) * _LANE)
    Opad = _LANE
    x = x.astype(compute_dtype)
    a0p = _pad_to(a0, (CP, Cpad)).astype(compute_dtype)
    b0p = _pad_to(b0, (1, Cpad)).astype(jnp.float32)
    a1p = _pad_to(a1, (Cpad, H1)).astype(compute_dtype)
    b1p = b1.astype(jnp.float32)
    a2p = a2.astype(compute_dtype)
    b2p = b2.astype(jnp.float32)
    a3p = _pad_to(a3, (H2, Opad)).astype(compute_dtype)
    b3p = _pad_to(b3, (1, Opad)).astype(jnp.float32)

    grid = (rows_pad // row_tile,)
    full = lambda i: (0, 0)

    w_elems = CP * Cpad + Cpad * H1 + H1 * H2 + H2 * Opad
    itemsize = jnp.dtype(compute_dtype).itemsize
    cost = pl.CostEstimate(
        flops=2 * rows_pad * (CP * Cpad + Cpad * H1 + H1 * H2 + H2 * Opad),
        transcendentals=2 * rows_pad * Opad,   # exp + approx reciprocal
        bytes_accessed=(rows_pad * CP * itemsize + w_elems * itemsize
                        + (Cpad + H1 + H2 + Opad) * 4 + rows_pad * Opad * 4))

    out = pl.pallas_call(
        _mlp_kernel,
        out_shape=jax.ShapeDtypeStruct((rows_pad, Opad), jnp.float32),
        grid_spec=pltpu.PrefetchScalarGridSpec(
            num_scalar_prefetch=0,
            grid=grid,
            in_specs=[
                pl.BlockSpec((row_tile, CP), lambda i: (i, 0)),
                pl.BlockSpec(a0p.shape, full), pl.BlockSpec(b0p.shape, full),
                pl.BlockSpec(a1p.shape, full), pl.BlockSpec(b1p.shape, full),
                pl.BlockSpec(a2p.shape, full), pl.BlockSpec(b2p.shape, full),
                pl.BlockSpec(a3p.shape, full), pl.BlockSpec(b3p.shape, full),
            ],
            out_specs=pl.BlockSpec((row_tile, Opad), lambda i: (i, 0)),
        ),
        compiler_params=pltpu.CompilerParams(
            dimension_semantics=("parallel",)),   # megacore-shardable on v7x
        cost_estimate=cost,
    )(x, a0p, b0p, a1p, b1p, a2p, b2p, a3p, b3p)

    # score.transpose(0,2).transpose(2,1).squeeze(-1)  ->  (B, H); keep lane 0
    return out[:rows, 0].reshape(B, H)


def make_params(key, input_dim, point_num, eps=1e-5):
    """Deterministic synthetic parameters with eval-mode BatchNorm folded in.
    pt_utils.Conv2d/Conv1d with bn=True disables the conv bias; the last
    Conv1d(256, 1, activation=None) has a bias and no BN."""
    ks = jax.random.split(key, 16)
    C = input_dim

    def bn_fold(kg, kb, km, kv, n):
        gamma = 1.0 + 0.1 * jax.random.normal(kg, (n,), jnp.float32)
        beta = 0.1 * jax.random.normal(kb, (n,), jnp.float32)
        mean = 0.1 * jax.random.normal(km, (n,), jnp.float32)
        var = 0.5 + jax.random.uniform(kv, (n,), jnp.float32)
        scale = gamma / jnp.sqrt(var + eps)
        shift = beta - mean * scale
        return scale, shift

    # weighted_mean: Conv2d(C, C, kernel_size=(1, point_num)), bn=True
    w1 = 0.05 * jax.random.normal(ks[0], (C, C, point_num), jnp.float32)
    s1, t1 = bn_fold(ks[1], ks[2], ks[3], ks[4], C)
    a0 = (w1.reshape(C, C * point_num) * s1[:, None]).T          # (C*P, C)
    b0 = t1.reshape(1, C)

    # conv1: Conv1d(C, 512, 1), bn=True
    w2 = 0.05 * jax.random.normal(ks[5], (512, C), jnp.float32)
    s2, t2 = bn_fold(ks[6], ks[7], ks[8], ks[9], 512)
    a1 = (w2 * s2[:, None]).T                                    # (C, 512)
    b1 = t2.reshape(1, 512)

    # score[0]: Conv1d(512, 256, 1), bn=True
    w3 = 0.05 * jax.random.normal(ks[10], (256, 512), jnp.float32)
    s3, t3 = bn_fold(ks[11], ks[12], ks[13], ks[14], 256)
    a2 = (w3 * s3[:, None]).T                                    # (512, 256)
    b2 = t3.reshape(1, 256)

    # score[1]: Conv1d(256, 1, 1, activation=None), bn=False -> bias, no BN
    w4 = 0.05 * jax.random.normal(ks[15], (1, 256), jnp.float32)
    a3 = w4.T                                                    # (256, 1)
    b3 = jnp.full((1, 1), 0.05, jnp.float32)

    return (a0, b0, a1, b1, a2, b2, a3, b3)


def reference(gather_feat, params):
    """Pure-JAX reference of the same folded forward pass."""
    B, C, H, P = gather_feat.shape
    x = jnp.transpose(gather_feat, (0, 2, 1, 3)).reshape(B * H, C * P)
    a0, b0, a1, b1, a2, b2, a3, b3 = params
    h = jnp.maximum(x @ a0 + b0, 0.0)
    h = jnp.maximum(h @ a1 + b1, 0.0)
    h = jnp.maximum(h @ a2 + b2, 0.0)
    return jax.nn.sigmoid(h @ a3 + b3).reshape(B, H)


if __name__ == "__main__":
    # Small shapes: input_dim=32, point_num=8, batch=2, 64 grasp candidates.
    # (conv1/score hidden widths 512/256 kept as hard-coded in the module.)
    B, C, H, P = 2, 32, 64, 8
    key = jax.random.PRNGKey(0)
    kx, kp = jax.random.split(key)
    gather_feat = jax.random.normal(kx, (B, C, H, P), jnp.float32)
    params = make_params(kp, C, P)

    ref = reference(gather_feat, params)

    # f32 matmul-input path (exact up to the approx EUP reciprocal in sigmoid).
    out_f32 = jax.block_until_ready(
        antipodal_predict_batch(gather_feat, params, row_tile=128,
                                compute_dtype=jnp.float32))
    assert out_f32.shape == (B, H)
    np.testing.assert_allclose(np.asarray(out_f32), np.asarray(ref),
                               rtol=5e-3, atol=5e-3)

    # bf16 matmul-input path (f32 accumulation + f32 epilogue) for v6e/v5e MXU.
    out_bf16 = jax.block_until_ready(
        antipodal_predict_batch(gather_feat, params, row_tile=128,
                                compute_dtype=jnp.bfloat16))
    np.testing.assert_allclose(np.asarray(out_bf16), np.asarray(ref),
                               rtol=2e-2, atol=2e-2)

    print("KERNEL_OK")
</pallas_src>

<mosaic_0001>
module attributes {stable_mosaic.version = 11 : i64} {
  func.func @_mlp_kernel(%arg0: i32, %arg1: memref<128x256xf32, #tpu.memory_space<vmem>>, %arg2: memref<256x128xf32, #tpu.memory_space<vmem>>, %arg3: memref<1x128xf32, #tpu.memory_space<vmem>>, %arg4: memref<128x512xf32, #tpu.memory_space<vmem>>, %arg5: memref<1x512xf32, #tpu.memory_space<vmem>>, %arg6: memref<512x256xf32, #tpu.memory_space<vmem>>, %arg7: memref<1x256xf32, #tpu.memory_space<vmem>>, %arg8: memref<256x128xf32, #tpu.memory_space<vmem>>, %arg9: memref<1x128xf32, #tpu.memory_space<vmem>>, %arg10: memref<128x128xf32, #tpu.memory_space<vmem>>) attributes {dimension_semantics = [#tpu.dimension_semantics<parallel>], iteration_bounds = array<i64: 1>, scalar_prefetch = 0 : i64, scratch_operands = 0 : i64, tpu.core_type = #tpu.core_type<tc>, window_params = [{transform_indices = @transform_0, window_bounds = array<i64: 128, 256>}, {pipeline_mode = #tpu.pipeline_mode<synchronous>, transform_indices = @transform_1, window_bounds = array<i64: 256, 128>}, {pipeline_mode = #tpu.pipeline_mode<synchronous>, transform_indices = @transform_2, window_bounds = array<i64: 1, 128>}, {pipeline_mode = #tpu.pipeline_mode<synchronous>, transform_indices = @transform_3, window_bounds = array<i64: 128, 512>}, {pipeline_mode = #tpu.pipeline_mode<synchronous>, transform_indices = @transform_4, window_bounds = array<i64: 1, 512>}, {pipeline_mode = #tpu.pipeline_mode<synchronous>, transform_indices = @transform_5, window_bounds = array<i64: 512, 256>}, {pipeline_mode = #tpu.pipeline_mode<synchronous>, transform_indices = @transform_6, window_bounds = array<i64: 1, 256>}, {pipeline_mode = #tpu.pipeline_mode<synchronous>, transform_indices = @transform_7, window_bounds = array<i64: 256, 128>}, {pipeline_mode = #tpu.pipeline_mode<synchronous>, transform_indices = @transform_8, window_bounds = array<i64: 1, 128>}, {transform_indices = @transform_9, window_bounds = array<i64: 128, 128>}]} {
    %c0 = arith.constant 0 : index
    %c0_0 = arith.constant 0 : index
    %0 = vector.load %arg1[%c0, %c0_0] : memref<128x256xf32, #tpu.memory_space<vmem>>, vector<128x256xf32>
    %c0_1 = arith.constant 0 : index
    %c0_2 = arith.constant 0 : index
    %1 = vector.load %arg2[%c0_1, %c0_2] : memref<256x128xf32, #tpu.memory_space<vmem>>, vector<256x128xf32>
    %cst = arith.constant dense<0.000000e+00> : vector<128x128xf32>
    %2 = tpu.matmul %0, %1, %cst {dimension_numbers = #tpu.dot_dimension_numbers<[1], [0], [0], [1], [0, 0, 1, 1], [], []>} : vector<128x256xf32>, vector<256x128xf32>, vector<128x128xf32> -> vector<128x128xf32>
    %c0_3 = arith.constant 0 : index
    %c0_4 = arith.constant 0 : index
    %3 = vector.load %arg3[%c0_3, %c0_4] : memref<1x128xf32, #tpu.memory_space<vmem>>, vector<1x128xf32>
    %4 = vector.broadcast %3 : vector<1x128xf32> to vector<128x128xf32>
    %5 = arith.addf %2, %4 : vector<128x128xf32>
    %cst_5 = arith.constant 0.000000e+00 : f32
    %6 = vector.broadcast %cst_5 : f32 to vector<128x128xf32>
    %7 = arith.maximumf %5, %6 : vector<128x128xf32>
    %c0_6 = arith.constant 0 : index
    %c0_7 = arith.constant 0 : index
    %8 = vector.load %arg4[%c0_6, %c0_7] : memref<128x512xf32, #tpu.memory_space<vmem>>, vector<128x512xf32>
    %cst_8 = arith.constant dense<0.000000e+00> : vector<128x512xf32>
    %9 = tpu.matmul %7, %8, %cst_8 {dimension_numbers = #tpu.dot_dimension_numbers<[1], [0], [0], [1], [0, 0, 1, 1], [], []>} : vector<128x128xf32>, vector<128x512xf32>, vector<128x512xf32> -> vector<128x512xf32>
    %c0_9 = arith.constant 0 : index
    %c0_10 = arith.constant 0 : index
    %10 = vector.load %arg5[%c0_9, %c0_10] : memref<1x512xf32, #tpu.memory_space<vmem>>, vector<1x512xf32>
    %11 = vector.broadcast %10 : vector<1x512xf32> to vector<128x512xf32>
    %12 = arith.addf %9, %11 : vector<128x512xf32>
    %cst_11 = arith.constant 0.000000e+00 : f32
    %13 = vector.broadcast %cst_11 : f32 to vector<128x512xf32>
    %14 = arith.maximumf %12, %13 : vector<128x512xf32>
    %c0_12 = arith.constant 0 : index
    %c0_13 = arith.constant 0 : index
    %15 = vector.load %arg6[%c0_12, %c0_13] : memref<512x256xf32, #tpu.memory_space<vmem>>, vector<512x256xf32>
    %cst_14 = arith.constant dense<0.000000e+00> : vector<128x256xf32>
    %16 = tpu.matmul %14, %15, %cst_14 {dimension_numbers = #tpu.dot_dimension_numbers<[1], [0], [0], [1], [0, 0, 1, 1], [], []>} : vector<128x512xf32>, vector<512x256xf32>, vector<128x256xf32> -> vector<128x256xf32>
    %c0_15 = arith.constant 0 : index
    %c0_16 = arith.constant 0 : index
    %17 = vector.load %arg7[%c0_15, %c0_16] : memref<1x256xf32, #tpu.memory_space<vmem>>, vector<1x256xf32>
    %18 = vector.broadcast %17 : vector<1x256xf32> to vector<128x256xf32>
    %19 = arith.addf %16, %18 : vector<128x256xf32>
    %cst_17 = arith.constant 0.000000e+00 : f32
    %20 = vector.broadcast %cst_17 : f32 to vector<128x256xf32>
    %21 = arith.maximumf %19, %20 : vector<128x256xf32>
    %c0_18 = arith.constant 0 : index
    %c0_19 = arith.constant 0 : index
    %22 = vector.load %arg8[%c0_18, %c0_19] : memref<256x128xf32, #tpu.memory_space<vmem>>, vector<256x128xf32>
    %cst_20 = arith.constant dense<0.000000e+00> : vector<128x128xf32>
    %23 = tpu.matmul %21, %22, %cst_20 {dimension_numbers = #tpu.dot_dimension_numbers<[1], [0], [0], [1], [0, 0, 1, 1], [], []>} : vector<128x256xf32>, vector<256x128xf32>, vector<128x128xf32> -> vector<128x128xf32>
    %c0_21 = arith.constant 0 : index
    %c0_22 = arith.constant 0 : index
    %24 = vector.load %arg9[%c0_21, %c0_22] : memref<1x128xf32, #tpu.memory_space<vmem>>, vector<1x128xf32>
    %25 = vector.broadcast %24 : vector<1x128xf32> to vector<128x128xf32>
    %26 = arith.addf %23, %25 : vector<128x128xf32>
    %cst_23 = arith.constant 0.000000e+00 : f32
    %27 = vector.broadcast %cst_23 : f32 to vector<128x128xf32>
    %28 = arith.subf %27, %26 : vector<128x128xf32>
    %29 = math.exp %28 : vector<128x128xf32>
    %cst_24 = arith.constant 1.000000e+00 : f32
    %30 = vector.broadcast %cst_24 : f32 to vector<128x128xf32>
    %31 = arith.addf %30, %29 : vector<128x128xf32>
    %32 = tpu.reciprocal %31 {approx = true} : vector<128x128xf32> -> vector<128x128xf32>
    %c0_25 = arith.constant 0 : index
    %c0_26 = arith.constant 0 : index
    %33 = vector.load %arg10[%c0_25, %c0_26] : memref<128x128xf32, #tpu.memory_space<vmem>>, vector<128x128xf32>
    tpu.vector_store %arg10[%c0_25, %c0_26], %32 {strides = array<i32>} : memref<128x128xf32, #tpu.memory_space<vmem>>, vector<128x128xf32>,
    return
  }
  func.func @transform_0(%arg0: i32) -> (i32, i32) {
    %c0_i32 = arith.constant 0 : i32
    %c0_i32_0 = arith.constant 0 : i32
    return %arg0, %c0_i32 : i32, i32
  }
  func.func @transform_1(%arg0: i32) -> (i32, i32) {
    %c0_i32 = arith.constant 0 : i32
    %c0_i32_0 = arith.constant 0 : i32
    %c0_i32_1 = arith.constant 0 : i32
    return %c0_i32, %c0_i32_0 : i32, i32
  }
  func.func @transform_2(%arg0: i32) -> (i32, i32) {
    %c0_i32 = arith.constant 0 : i32
    %c0_i32_0 = arith.constant 0 : i32
    %c0_i32_1 = arith.constant 0 : i32
    return %c0_i32, %c0_i32_0 : i32, i32
  }
  func.func @transform_3(%arg0: i32) -> (i32, i32) {
    %c0_i32 = arith.constant 0 : i32
    %c0_i32_0 = arith.constant 0 : i32
    %c0_i32_1 = arith.constant 0 : i32
    return %c0_i32, %c0_i32_0 : i32, i32
  }
  func.func @transform_4(%arg0: i32) -> (i32, i32) {
    %c0_i32 = arith.constant 0 : i32
    %c0_i32_0 = arith.constant 0 : i32
    %c0_i32_1 = arith.constant 0 : i32
    return %c0_i32, %c0_i32_0 : i32, i32
  }
  func.func @transform_5(%arg0: i32) -> (i32, i32) {
    %c0_i32 = arith.constant 0 : i32
    %c0_i32_0 = arith.constant 0 : i32
    %c0_i32_1 = arith.constant 0 : i32
    return %c0_i32, %c0_i32_0 : i32, i32
  }
  func.func @transform_6(%arg0: i32) -> (i32, i32) {
    %c0_i32 = arith.constant 0 : i32
    %c0_i32_0 = arith.constant 0 : i32
    %c0_i32_1 = arith.constant 0 : i32
    return %c0_i32, %c0_i32_0 : i32, i32
  }
  func.func @transform_7(%arg0: i32) -> (i32, i32) {
    %c0_i32 = arith.constant 0 : i32
    %c0_i32_0 = arith.constant 0 : i32
    %c0_i32_1 = arith.constant 0 : i32
    return %c0_i32, %c0_i32_0 : i32, i32
  }
  func.func @transform_8(%arg0: i32) -> (i32, i32) {
    %c0_i32 = arith.constant 0 : i32
    %c0_i32_0 = arith.constant 0 : i32
    %c0_i32_1 = arith.constant 0 : i32
    return %c0_i32, %c0_i32_0 : i32, i32
  }
  func.func @transform_9(%arg0: i32) -> (i32, i32) {
    %c0_i32 = arith.constant 0 : i32
    %c0_i32_0 = arith.constant 0 : i32
    return %arg0, %c0_i32 : i32, i32
  }
}

</mosaic_0001>

<bundles_post_ra>
// kernel: tpu_custom_call.1
= control target key start
LH: loop header
LB: loop body
LE: loop exit
PB: predicated region body
PF: predicated region fallthrough
CT: control target
= control target key end

     0   :  { %14 = vsyncpa [#allocation3], 0  ;;  %s2748_s0 = inlined_call_operand.hbm [shape: f32[128,256], index: 0, kind: input, shape index: {}]   ;;  %s2749_s1 = inlined_call_operand.hbm [shape: f32[256,128], index: 1, kind: input, shape index: {}]   ;;  %s2750_s2 = inlined_call_operand.vmem [shape: f32[1,128], index: 2, kind: input, shape index: {}]   ;;  %s2751_s3 = inlined_call_operand.hbm [shape: f32[128,512], index: 3, kind: input, shape index: {}]   ;;  %s2752_s4 = inlined_call_operand.vmem [shape: f32[1,512], index: 4, kind: input, shape index: {}]   ;;  %s2753_s5 = inlined_call_operand.hbm [shape: f32[512,256], index: 5, kind: input, shape index: {}]   ;;  %s2754_s6 = inlined_call_operand.vmem [shape: f32[1,256], index: 6, kind: input, shape index: {}]   ;;  %s2755_s7 = inlined_call_operand.hbm [shape: f32[256,128], index: 7, kind: input, shape index: {}]   ;;  %s2756_s8 = inlined_call_operand.vmem [shape: f32[1,128], index: 8, kind: input, shape index: {}]   ;;  %s2757_s9 = inlined_call_operand.hbm [shape: f32[128,128], index: 9, kind: output, shape index: {}]  }
   0x1   :  { %15 = vsyncpa [#allocation6], 0 }
   0x2   :  { %16 = vsyncpa [#allocation9], 0 }
   0x3   :  { %17 = vsyncpa [#allocation4], 0  ;;  %s2297_s30 = smov [#allocation5]   ;;  %s2157_s13 = scalar_lea.hbm %s2749_s1, 4096 }
   0x4   :  { %s35_s10 = sshll.u32 %s2297_s30, 4  ;;  %p2158_p0 = scmp.ne.s32.totalorder %s2749_s1, %s2157_s13  ;;  %s36_s10 = int_to_ptr.vmem [resolvable:$true] %s35_s10 }
   0x5   :  { %p2161_p1 = scmp.lt.u32.totalorder %s2157_s13, %s2749_s1 }
   0x7   :  { %p2163_p2 = pnand %p2161_p1, %p2158_p0 }
   0x9   :  { %2166 = shalt.err (!%p2163_p2)
}
   0xa   :  { %s2167_s18 = scalar_lea.vmem %s36_s10, 4096  ;;  %p2172_p4 = scmp.lt.s32.totalorder %s36_s10, %s36_s10 }
   0xb   :  { %p2168_p3 = scmp.ne.s32.totalorder %s36_s10, %s2167_s18  ;;  %p2173_p5 = scmp.lt.s32.totalorder %s2167_s18, %s2167_s18 }
   0xd   :  { %p2174_p6 = por %p2173_p5, %p2172_p4 }
   0xf   :  { %p2175_p7 = pnand %p2174_p6, %p2168_p3 }
  0x11   :  { %2178 = shalt.err (!%p2175_p7)
}
  0x12   :  { %s2298_s19 = smov 128   ;;  %s2299_s20 = smov 8  }
  0x13   :  { %41 = dma.hbm_to_vmem [thread:$0]  %s2749_s1, 4096, %s36_s10, [#allocation6], %s2298_s19, %s2298_s19, %s2299_s20  }
  0x14   :  { %s2300_s23 = smov [#allocation8]   ;;  %s2301_s25 = smov [#allocation2]  }
  0x15   :  { %s63_s24 = sshll.u32 %s2300_s23, 4  ;;  %s23_s26 = sshll.u32 %s2301_s25, 4  ;;  %s64_s24 = int_to_ptr.vmem [resolvable:$true] %s63_s24  ;;  %s24_s26 = int_to_ptr.vmem [resolvable:$true] %s23_s26 }
  0x16   :  { %s2179_s29 = scalar_lea.hbm %s2753_s5, 16384 }
  0x17   :  { %p2180_p8 = scmp.ne.s32.totalorder %s2753_s5, %s2179_s29  ;;  %p2183_p9 = scmp.lt.u32.totalorder %s2179_s29, %s2753_s5 }
  0x19   :  { %p2185_p10 = pnand %p2183_p9, %p2180_p8 }
  0x1b   :  { %2188 = shalt.err (!%p2185_p10)
}
  0x1c   :  { %s2189_s1 = scalar_lea.vmem %s64_s24, 16384  ;;  %p2194_p12 = scmp.lt.s32.totalorder %s64_s24, %s64_s24 }
  0x1d   :  { %p2190_p11 = scmp.ne.s32.totalorder %s64_s24, %s2189_s1  ;;  %p2195_p13 = scmp.lt.s32.totalorder %s2189_s1, %s2189_s1 }
  0x1f   :  { %p2196_p0 = por %p2195_p13, %p2194_p12 }
  0x21   :  { %p2197_p1 = pnand %p2196_p0, %p2190_p11 }
  0x23   :  { %2200 = shalt.err (!%p2197_p1)
}
  0x24   :  { %s2302_s10 = smov 256   ;;  %s2303_s14 = smov 16  }
  0x25   :  { %69 = dma.hbm_to_vmem [thread:$0]  %s2753_s5, 16384, %s64_s24, [#allocation9], %s2302_s10, %s2302_s10, %s2303_s14  }
  0x26   :  { %s2201_s21 = scalar_lea.hbm %s2748_s0, 4096 }
  0x27   :  { %p2202_p2 = scmp.ne.s32.totalorder %s2748_s0, %s2201_s21  ;;  %p2205_p3 = scmp.lt.u32.totalorder %s2201_s21, %s2748_s0 }
  0x29   :  { %p2207_p4 = pnand %p2205_p3, %p2202_p2 }
  0x2b   :  { %2210 = shalt.err (!%p2207_p4)
}
  0x2c   :  { %s2211_s28 = scalar_lea.vmem %s24_s26, 4096  ;;  %p2216_p6 = scmp.lt.s32.totalorder %s24_s26, %s24_s26 }
  0x2d   :  { %p2212_p5 = scmp.ne.s32.totalorder %s24_s26, %s2211_s28  ;;  %p2217_p7 = scmp.lt.s32.totalorder %s2211_s28, %s2211_s28 }
  0x2f   :  { %p2218_p8 = por %p2217_p7, %p2216_p6 }
  0x31   :  { %p2219_p9 = pnand %p2218_p8, %p2212_p5 }
  0x33   :  { %2222 = shalt.err (!%p2219_p9)
}
  0x34   :  { %29 = dma.hbm_to_vmem [thread:$0]  %s2748_s0, 4096, %s24_s26, [#allocation3], %s2302_s10, %s2302_s10, %s2303_s14  }
  0x35   :  { %s2304_s29 = smov [#allocation7]   ;;  %s2223_s13 = scalar_lea.hbm %s2751_s3, 8192 }
  0x36   :  { %s49_s30 = sshll.u32 %s2304_s29, 4  ;;  %p2224_p10 = scmp.ne.s32.totalorder %s2751_s3, %s2223_s13  ;;  %s50_s30 = int_to_ptr.vmem [resolvable:$true] %s49_s30 }
  0x37   :  { %p2227_p11 = scmp.lt.u32.totalorder %s2223_s13, %s2751_s3 }
  0x39   :  { %p2229_p12 = pnand %p2227_p11, %p2224_p10 }
  0x3b   :  { %2232 = shalt.err (!%p2229_p12)
}
  0x3c   :  { %s2233_s18 = scalar_lea.vmem %s50_s30, 8192  ;;  %p2238_p0 = scmp.lt.s32.totalorder %s50_s30, %s50_s30 }
  0x3d   :  { %p2234_p13 = scmp.ne.s32.totalorder %s50_s30, %s2233_s18  ;;  %p2239_p1 = scmp.lt.s32.totalorder %s2233_s18, %s2233_s18 }
  0x3f   :  { %p2240_p2 = por %p2239_p1, %p2238_p0 }
  0x41   :  { %p2241_p3 = pnand %p2240_p2, %p2234_p13 }
  0x43   :  { %2244 = shalt.err (!%p2241_p3)
}
  0x44   :  { %s2305_s0 = smov 512   ;;  %s2306_s26 = smov 32  }
  0x45   :  { %55 = dma.hbm_to_vmem [thread:$0]  %s2751_s3, 8192, %s50_s30, [#allocation6], %s2305_s0, %s2305_s0, %s2306_s26  }
  0x46   :  { %s2307_s21 = smov [#allocation10]   ;;  %s2245_s27 = scalar_lea.hbm %s2755_s7, 4096 }
  0x47   :  { %s77_s22 = sshll.u32 %s2307_s21, 4  ;;  %p2246_p4 = scmp.ne.s32.totalorder %s2755_s7, %s2245_s27  ;;  %s78_s22 = int_to_ptr.vmem [resolvable:$true] %s77_s22 }
  0x48   :  { %p2249_p5 = scmp.lt.u32.totalorder %s2245_s27, %s2755_s7 }
  0x4a   :  { %p2251_p6 = pnand %p2249_p5, %p2246_p4 }
  0x4c   :  { %2254 = shalt.err (!%p2251_p6)
}
  0x4d   :  { %s2255_s11 = scalar_lea.vmem %s78_s22, 4096  ;;  %p2260_p8 = scmp.lt.s32.totalorder %s78_s22, %s78_s22 }
  0x4e   :  { %p2256_p7 = scmp.ne.s32.totalorder %s78_s22, %s2255_s11  ;;  %p2261_p9 = scmp.lt.s32.totalorder %s2255_s11, %s2255_s11 }
  0x50   :  { %p2262_p10 = por %p2261_p9, %p2260_p8 }
  0x52   :  { %p2263_p11 = pnand %p2262_p10, %p2256_p7 }
  0x54   :  { %2266 = shalt.err (!%p2263_p11)
}
  0x55   :  { %83 = dma.hbm_to_vmem [thread:$0]  %s2755_s7, 4096, %s78_s22, [#allocation9], %s2298_s19, %s2298_s19, %s2299_s20  }
  0x56   :  { %2289 = dma.done.wait [#allocation3], 4096  }
  0x57   :  { %2290 = vsyncadd [#allocation3], 4294963200 }
  0x58   :  { %2291 = dma.done.wait [#allocation6], 12288  }
  0x59   :  { %2292 = vsyncadd [#allocation6], 4294955008 }
  0x5a   :  { %2293 = dma.done.wait [#allocation9], 20480  }
  0x5b   :  { %2294 = vsyncadd [#allocation9], 4294946816  ;;  %v149_v0 = vld [vmem:[#allocation5 + $0x80] sm:$0xff]  ;;  %v150_v1 = vld [vmem:[#allocation5 + $0x88] sm:$0xff] }
  0x5c   :  { %v133_v2 = vld [vmem:[#allocation5] sm:$0xff]  ;;  %v1760_v3 = vpack.c.bf16 %v150_v1, %v149_v0  ;;  %v134_v4 = vld [vmem:[#allocation5 + $0x8] sm:$0xff]  ;;  %v151_v5 = vld [vmem:[#allocation5 + $0x90] sm:$0xff] }
  0x5d   :  { %v152_v6 = vld [vmem:[#allocation5 + $0x98] sm:$0xff]  ;;  %v1762_v7 = vpack.c.bf16 %v134_v4, %v133_v2  ;;  %v135_v9 = vld [vmem:[#allocation5 + $0x10] sm:$0xff]  ;;  %v153_v11 = vld [vmem:[#allocation5 + $0xa0] sm:$0xff] }
  0x5e   :  { %v1764_v8 = vpack.c.bf16 %v152_v6, %v151_v5  ;;  %v136_v10 = vld [vmem:[#allocation5 + $0x18] sm:$0xff]  ;;  %1761 = vmatprep.subr.bf16.mxu0 %v1760_v3  ;;  %v154_v12 = vld [vmem:[#allocation5 + $0xa8] sm:$0xff]  ;;  %v137_v15 = vld [vmem:[#allocation5 + $0x20] sm:$0xff] }
  0x5f   :  { %1763 = vmatpush3.bf16.msra.mxu0 %v1762_v7  ;;  %v1766_v13 = vpack.c.bf16 %v136_v10, %v135_v9  ;;  %v1768_v14 = vpack.c.bf16 %v154_v12, %v153_v11  ;;  %v138_v16 = vld [vmem:[#allocation5 + $0x28] sm:$0xff]  ;;  %v155_v17 = vld [vmem:[#allocation5 + $0xb0] sm:$0xff]  ;;  %v156_v18 = vld [vmem:[#allocation5 + $0xb8] sm:$0xff] }
  0x60   :  { %1765 = vmatprep.subr.bf16.mxu0 %v1764_v8  ;;  %v1770_v19 = vpack.c.bf16 %v138_v16, %v137_v15  ;;  %v1772_v20 = vpack.c.bf16 %v156_v18, %v155_v17  ;;  %v139_v21 = vld [vmem:[#allocation5 + $0x30] sm:$0xff]  ;;  %v140_v22 = vld [vmem:[#allocation5 + $0x38] sm:$0xff]  ;;  %v157_v23 = vld [vmem:[#allocation5 + $0xc0] sm:$0xff] }
  0x61   :  { %v158_v24 = vld [vmem:[#allocation5 + $0xc8] sm:$0xff]  ;;  %v1774_v26 = vpack.c.bf16 %v140_v22, %v139_v21  ;;  %v141_v28 = vld [vmem:[#allocation5 + $0x40] sm:$0xff]  ;;  %v159_v30 = vld [vmem:[#allocation5 + $0xd0] sm:$0xff] }
  0x62   :  { %v102_v25 = vld [vmem:[#allocation2 + $0x8] sm:$0xff]  ;;  %v1776_v27 = vpack.c.bf16 %v158_v24, %v157_v23  ;;  %v160_v31 = vld [vmem:[#allocation5 + $0xd8] sm:$0xff]  ;;  %v143_v34 = vld [vmem:[#allocation5 + $0x50] sm:$0xff] }
  0x63   :  { %1767 = vmatpush3.bf16.msra.mxu0 %v1766_v13  ;;  %236 = vmatprep.mubr.f32.mxu0 %v102_v25  ;;  %v142_v29 = vld [vmem:[#allocation5 + $0x48] sm:$0xff]  ;;  %v1780_v33 = vpack.c.bf16 %v160_v31, %v159_v30  ;;  %v144_v35 = vld [vmem:[#allocation5 + $0x58] sm:$0xff]  ;;  %v161_v36 = vld [vmem:[#allocation5 + $0xe0] sm:$0xff] }
  0x64   :  { %1769 = vmatprep.subr.bf16.mxu0 %v1768_v14  ;;  %v1778_v32 = vpack.c.bf16 %v142_v29, %v141_v28  ;;  %v162_v37 = vld [vmem:[#allocation5 + $0xe8] sm:$0xff]  ;;  %v1782_v38 = vpack.c.bf16 %v144_v35, %v143_v34  ;;  %v145_v39 = vld [vmem:[#allocation5 + $0x60] sm:$0xff]  ;;  %v163_v44 = vld [vmem:[#allocation5 + $0xf0] sm:$0xff] }
  0x65   :  { %v1784_v40 = vpack.c.bf16 %v162_v37, %v161_v36  ;;  %v146_v41 = vld [vmem:[#allocation5 + $0x68] sm:$0xff]  ;;  %v164_v45 = vld [vmem:[#allocation5 + $0xf8] sm:$0xff]  ;;  %v333_v47 = vld [vmem:[#allocation7] sm:$0xff] }
  0x66   :  { %v334_v42 = vld [vmem:[#allocation7 + $0x8] sm:$0xff]  ;;  %v337_v48 = vld [vmem:[#allocation7 + $0x20] sm:$0xff]  ;;  %v1786_v49 = vpack.c.bf16 %v146_v41, %v145_v39  ;;  %v147_v50 = vld [vmem:[#allocation5 + $0x70] sm:$0xff]  ;;  %v1788_v54 = vpack.c.bf16 %v164_v45, %v163_v44 }
  0x67   :  { %1771 = vmatpush3.bf16.msra.mxu0 %v1770_v19  ;;  %v338_v43 = vld [vmem:[#allocation7 + $0x28] sm:$0xff]  ;;  %v1794_v51 = vpack.c.bf16 %v337_v48, %v333_v47  ;;  %v148_v55 = vld [vmem:[#allocation5 + $0x78] sm:$0xff]  ;;  %v341_v57 = vld [vmem:[#allocation7 + $0x40] sm:$0xff] }
  0x68   :  { %1773 = vmatprep.subr.bf16.mxu0 %v1772_v20  ;;  %v1792_v46 = vpack.c.bf16 %v338_v43, %v334_v42  ;;  %v342_v52 = vld [vmem:[#allocation7 + $0x48] sm:$0xff]  ;;  %v345_v58 = vld [vmem:[#allocation7 + $0x60] sm:$0xff]  ;;  %v336_v59 = vld [vmem:[#allocation7 + $0x18] sm:$0xff]  ;;  %v1790_v0 = vpack.c.bf16 %v148_v55, %v147_v50 }
  0x69   :  { %v346_v53 = vld [vmem:[#allocation7 + $0x68] sm:$0xff]  ;;  %v340_v60 = vld [vmem:[#allocation7 + $0x38] sm:$0xff]  ;;  %v1798_v61 = vpack.c.bf16 %v345_v58, %v341_v57  ;;  %v335_v1 = vld [vmem:[#allocation7 + $0x10] sm:$0xff] }
  0x6a   :  { %1793 = vmatprep.subr.bf16.mxu1 %v1792_v46  ;;  %v1796_v56 = vpack.c.bf16 %v346_v53, %v342_v52  ;;  %v350_v62 = vld [vmem:[#allocation7 + $0x88] sm:$0xff]  ;;  %v349_v3 = vld [vmem:[#allocation7 + $0x80] sm:$0xff]  ;;  %v1824_v5 = vpack.c.bf16 %v340_v60, %v336_v59  ;;  %v339_v6 = vld [vmem:[#allocation7 + $0x30] sm:$0xff] }
  0x6b   :  { %1775 = vmatpush3.bf16.msra.mxu0 %v1774_v26  ;;  %1795 = vmatpush1.bf16.msra.mxu1 %v1794_v51  ;;  %v354_v63 = vld [vmem:[#allocation7 + $0xa8] sm:$0xff]  ;;  %v353_v4 = vld [vmem:[#allocation7 + $0xa0] sm:$0xff]  ;;  %v344_v9 = vld [vmem:[#allocation7 + $0x58] sm:$0xff]  ;;  %v1826_v16 = vpack.c.bf16 %v339_v6, %v335_v1 }
  0x6c   :  { %1777 = vmatprep.subr.bf16.mxu0 %v1776_v27  ;;  %1797 = vmatprep.subr.bf16.mxu1 %v1796_v56  ;;  %v1800_v2 = vpack.c.bf16 %v354_v63, %v350_v62  ;;  %v358_v7 = vld [vmem:[#allocation7 + $0xc8] sm:$0xff]  ;;  %v348_v10 = vld [vmem:[#allocation7 + $0x78] sm:$0xff]  ;;  %v1802_v11 = vpack.c.bf16 %v353_v4, %v349_v3  ;;  %v357_v13 = vld [vmem:[#allocation7 + $0xc0] sm:$0xff] }
  0x6d   :  { %v362_v8 = vld [vmem:[#allocation7 + $0xe8] sm:$0xff]  ;;  %v361_v14 = vld [vmem:[#allocation7 + $0xe0] sm:$0xff]  ;;  %v104_v19 = vld [vmem:[#allocation2 + $0x18] sm:$0xff]  ;;  %v1828_v20 = vpack.c.bf16 %v348_v10, %v344_v9 }
  0x6e   :  { %v1804_v12 = vpack.c.bf16 %v362_v8, %v358_v7  ;;  %v101_v15 = vld [vmem:[#allocation2] sm:$0xff]  ;;  %v366_v17 = vld [vmem:[#allocation7 + $0x108] sm:$0xff]  ;;  %v343_v21 = vld [vmem:[#allocation7 + $0x50] sm:$0xff]  ;;  %v1806_v25 = vpack.c.bf16 %v361_v14, %v357_v13 }
  0x6f   :  { %1779 = vmatpush3.bf16.msra.mxu0 %v1778_v32  ;;  %1799 = vmatpush1.bf16.msra.mxu1 %v1798_v61  ;;  %v370_v18 = vld [vmem:[#allocation7 + $0x128] sm:$0xff]  ;;  %v347_v22 = vld [vmem:[#allocation7 + $0x70] sm:$0xff]  ;;  %v352_v23 = vld [vmem:[#allocation7 + $0x98] sm:$0xff] }
  0x70   :  { %1781 = vmatprep.subr.bf16.mxu0 %v1780_v33  ;;  %1801 = vmatprep.subr.bf16.mxu1 %v1800_v2  ;;  %v356_v24 = vld [vmem:[#allocation7 + $0xb8] sm:$0xff]  ;;  %v1808_v26 = vpack.c.bf16 %v370_v18, %v366_v17  ;;  %v365_v27 = vld [vmem:[#allocation7 + $0x100] sm:$0xff]  ;;  %v103_v29 = vld [vmem:[#allocation2 + $0x10] sm:$0xff]  ;;  %v1830_v30 = vpack.c.bf16 %v347_v22, %v343_v21 }
  0x71   :  { %v369_v28 = vld [vmem:[#allocation7 + $0x120] sm:$0xff]  ;;  %v374_v31 = vld [vmem:[#allocation7 + $0x148] sm:$0xff]  ;;  %v1832_v34 = vpack.c.bf16 %v356_v24, %v352_v23  ;;  %v351_v35 = vld [vmem:[#allocation7 + $0x90] sm:$0xff] }
  0x72   :  { %v378_v32 = vld [vmem:[#allocation7 + $0x168] sm:$0xff]  ;;  %v355_v36 = vld [vmem:[#allocation7 + $0xb0] sm:$0xff]  ;;  %v360_v37 = vld [vmem:[#allocation7 + $0xd8] sm:$0xff]  ;;  %v1810_v39 = vpack.c.bf16 %v369_v28, %v365_v27 }
  0x73   :  { %1783 = vmatpush3.bf16.msra.mxu0 %v1782_v38  ;;  %1803 = vmatpush1.bf16.msra.mxu1 %v1802_v11  ;;  %v106_v33 = vld [vmem:[#allocation2 + $0x28] sm:$0xff]  ;;  %v364_v38 = vld [vmem:[#allocation7 + $0xf8] sm:$0xff]  ;;  %v373_v41 = vld [vmem:[#allocation7 + $0x140] sm:$0xff]  ;;  %v1834_v44 = vpack.c.bf16 %v355_v36, %v351_v35 }
  0x74   :  { %1785 = vmatprep.subr.bf16.mxu0 %v1784_v40  ;;  %1805 = vmatprep.subr.bf16.mxu1 %v1804_v12  ;;  %v1812_v40 = vpack.c.bf16 %v378_v32, %v374_v31  ;;  %v377_v42 = vld [vmem:[#allocation7 + $0x160] sm:$0xff]  ;;  %v108_v45 = vld [vmem:[#allocation2 + $0x38] sm:$0xff]  ;;  %v1836_v46 = vpack.c.bf16 %v364_v38, %v360_v37  ;;  %v359_v47 = vld [vmem:[#allocation7 + $0xd0] sm:$0xff] }
  0x75   :  { %v105_v43 = vld [vmem:[#allocation2 + $0x20] sm:$0xff]  ;;  %v363_v48 = vld [vmem:[#allocation7 + $0xf0] sm:$0xff]  ;;  %v372_v50 = vld [vmem:[#allocation7 + $0x138] sm:$0xff]  ;;  %v1814_v51 = vpack.c.bf16 %v377_v42, %v373_v41 }
  0x76   :  { %v107_v52 = vld [vmem:[#allocation2 + $0x30] sm:$0xff]  ;;  %v1838_v53 = vpack.c.bf16 %v363_v48, %v359_v47  ;;  %v376_v58 = vld [vmem:[#allocation7 + $0x158] sm:$0xff]  ;;  %v109_v60 = vld [vmem:[#allocation2 + $0x40] sm:$0xff]  ;;  %v2308_v48 = vmov 0.0  }
  0x77   :  { %1787 = vmatpush3.bf16.msra.mxu0 %v1786_v49  ;;  %1807 = vmatpush1.bf16.msra.mxu1 %v1806_v25  ;;  %v368_v49 = vld [vmem:[#allocation7 + $0x118] sm:$0xff]  ;;  %v367_v56 = vld [vmem:[#allocation7 + $0x110] sm:$0xff]  ;;  %v114_v4 = vld [vmem:[#allocation2 + $0x68] sm:$0xff] }
  0x78   :  { %1789 = vmatprep.subr.bf16.mxu0 %v1788_v54  ;;  %1809 = vmatprep.subr.bf16.mxu1 %v1808_v26  ;;  %v110_v54 = vld [vmem:[#allocation2 + $0x48] sm:$0xff]  ;;  %v1840_v55 = vpack.c.bf16 %v372_v50, %v368_v49  ;;  %v371_v57 = vld [vmem:[#allocation7 + $0x130] sm:$0xff]  ;;  %v380_v59 = vld [vmem:[#allocation7 + $0x178] sm:$0xff] }
  0x79   :  { %v1842_v61 = vpack.c.bf16 %v371_v57, %v367_v56  ;;  %v112_v62 = vld [vmem:[#allocation2 + $0x58] sm:$0xff]  ;;  %v1844_v63 = vpack.c.bf16 %v380_v59, %v376_v58  ;;  %v379_v1 = vld [vmem:[#allocation7 + $0x170] sm:$0xff]  ;;  %v118_v8 = vld [vmem:[#allocation2 + $0x88] sm:$0xff]  ;;  %483 = vmatprep.mubr.f32.mxu1 %v2308_v48 }
  0x7a   :  { %v111_v2 = vld [vmem:[#allocation2 + $0x50] sm:$0xff]  ;;  %v116_v6 = vld [vmem:[#allocation2 + $0x78] sm:$0xff]  ;;  %v117_v9 = vld [vmem:[#allocation2 + $0x80] sm:$0xff] }
  0x7b   :  { %1791 = vmatpush3.bf16.msra.mxu0 %v1790_v0  ;;  %1811 = vmatpush1.bf16.msra.mxu1 %v1810_v39  ;;  %v375_v0 = vld [vmem:[#allocation7 + $0x150] sm:$0xff]  ;;  %v120_v10 = vld [vmem:[#allocation2 + $0x98] sm:$0xff]  ;;  %v122_v12 = vld [vmem:[#allocation2 + $0xa8] sm:$0xff] }
  0x7c   :  { %1825 = vmatprep.subr.bf16.mxu0 %v1824_v5  ;;  %1813 = vmatprep.subr.bf16.mxu1 %v1812_v40  ;;  %v1846_v3 = vpack.c.bf16 %v379_v1, %v375_v0  ;;  %v113_v5 = vld [vmem:[#allocation2 + $0x60] sm:$0xff]  ;;  %v115_v7 = vld [vmem:[#allocation2 + $0x70] sm:$0xff]  ;;  %v124_v14 = vld [vmem:[#allocation2 + $0xb8] sm:$0xff] }
  0x7d   :  { %v119_v11 = vld [vmem:[#allocation2 + $0x90] sm:$0xff]  ;;  %v121_v13 = vld [vmem:[#allocation2 + $0xa0] sm:$0xff]  ;;  %v128_v18 = vld [vmem:[#allocation2 + $0xd8] sm:$0xff] }
  0x7e   :  { %237 = vmatmul.mubr.f32.vlgmr.msra.gmra.mrb[0].mxu0 %v101_v15  ;;  %v123_v15 = vld [vmem:[#allocation2 + $0xb0] sm:$0xff]  ;;  %v125_v17 = vld [vmem:[#allocation2 + $0xc0] sm:$0xff]  ;;  %v132_v22 = vld [vmem:[#allocation2 + $0xf8] sm:$0xff] }
  0x7f   :  { %241 = vmatprep.mubr.f32.mxu0 %v104_v19  ;;  %1827 = vmatpush1.bf16.msra.mxu0 %v1826_v16  ;;  %v126_v16 = vld [vmem:[#allocation2 + $0xc8] sm:$0xff]  ;;  %v127_v19 = vld [vmem:[#allocation2 + $0xd0] sm:$0xff]  ;;  %v129_v21 = vld [vmem:[#allocation2 + $0xe0] sm:$0xff] }
  0x80   :  { %1829 = vmatprep.subr.bf16.mxu0 %v1828_v20  ;;  %1815 = vmatpush1.bf16.msra.mxu1 %v1814_v51  ;;  %v130_v20 = vld [vmem:[#allocation2 + $0xe8] sm:$0xff]  ;;  %v131_v23 = vld [vmem:[#allocation2 + $0xf0] sm:$0xff]  ;;  %v384_v26 = vld [vmem:[#allocation7 + $0x198] sm:$0xff] }
  0x81   :  { %v382_v24 = vld [vmem:[#allocation7 + $0x188] sm:$0xff]  ;;  %v388_v28 = vld [vmem:[#allocation7 + $0x1b8] sm:$0xff]  ;;  %v389_v41 = vld [vmem:[#allocation7 + $0x1c0] sm:$0xff] }
  0x82   :  { %242 = vmatmul.mubr.f32.gmra.mrb[2].mxu0 %v103_v29  ;;  %v386_v25 = vld [vmem:[#allocation7 + $0x1a8] sm:$0xff]  ;;  %v381_v29 = vld [vmem:[#allocation7 + $0x180] sm:$0xff]  ;;  %v1848_v31 = vpack.c.bf16 %v388_v28, %v384_v26  ;;  %v392_v38 = vld [vmem:[#allocation7 + $0x1d8] sm:$0xff] }
  0x83   :  { %246 = vmatprep.mubr.f32.mxu0 %v106_v33  ;;  %1831 = vmatpush1.bf16.msra.mxu0 %v1830_v30  ;;  %v1816_v27 = vpack.c.bf16 %v386_v25, %v382_v24  ;;  %v385_v30 = vld [vmem:[#allocation7 + $0x1a0] sm:$0xff]  ;;  %v383_v33 = vld [vmem:[#allocation7 + $0x190] sm:$0xff]  ;;  %v390_v36 = vld [vmem:[#allocation7 + $0x1c8] sm:$0xff] }
  0x84   :  { %1833 = vmatprep.subr.bf16.mxu0 %v1832_v34  ;;  %v1818_v32 = vpack.c.bf16 %v385_v30, %v381_v29  ;;  %v387_v34 = vld [vmem:[#allocation7 + $0x1b0] sm:$0xff]  ;;  %v394_v37 = vld [vmem:[#allocation7 + $0x1e8] sm:$0xff]  ;;  %v396_v40 = vld [vmem:[#allocation7 + $0x1f8] sm:$0xff] }
  0x85   :  { %1817 = vmatprep.subr.bf16.mxu1 %v1816_v27  ;;  %v1850_v35 = vpack.c.bf16 %v387_v34, %v383_v33  ;;  %v1820_v39 = vpack.c.bf16 %v394_v37, %v390_v36  ;;  %v393_v42 = vld [vmem:[#allocation7 + $0x1e0] sm:$0xff]  ;;  %v806_v49 = vld [vmem:[#allocation8 + $0x8] sm:$0xff]  ;;  %v808_v50 = vld [vmem:[#allocation8 + $0x18] sm:$0xff] }
  0x86   :  { %247 = vmatmul.mubr.f32.gmra.mrb[4].mxu0 %v105_v43  ;;  %1819 = vmatpush1.bf16.msra.mxu1 %v1818_v32  ;;  %v1852_v43 = vpack.c.bf16 %v396_v40, %v392_v38  ;;  %v1856_v51 = vpack.c.bf16 %v808_v50, %v806_v49  ;;  %v805_v56 = vld [vmem:[#allocation8] sm:$0xff]  ;;  %v807_v57 = vld [vmem:[#allocation8 + $0x10] sm:$0xff]  ;;  %v822_v29 = vld [vmem:[#allocation8 + $0x88] sm:$0xff] }
  0x87   :  { %251 = vmatprep.mubr.f32.mxu0 %v108_v45  ;;  %1835 = vmatpush1.bf16.msra.mxu0 %v1834_v44  ;;  %v1822_v44 = vpack.c.bf16 %v393_v42, %v389_v41  ;;  %v391_v45 = vld [vmem:[#allocation7 + $0x1d0] sm:$0xff]  ;;  %v1858_v1 = vpack.c.bf16 %v807_v57, %v805_v56  ;;  %v817_v25 = vld [vmem:[#allocation8 + $0x60] sm:$0xff]  ;;  %v824_v30 = vld [vmem:[#allocation8 + $0x98] sm:$0xff] }
  0x88   :  { %1837 = vmatprep.subr.bf16.mxu0 %v1836_v46  ;;  %v395_v46 = vld [vmem:[#allocation7 + $0x1f0] sm:$0xff]  ;;  %1821 = vmatprep.subr.bf16.mxu1 %v1820_v39  ;;  %v821_v36 = vld [vmem:[#allocation8 + $0x80] sm:$0xff]  ;;  %v826_v40 = vld [vmem:[#allocation8 + $0xa8] sm:$0xff] }
  0x89   :  { %v1854_v47 = vpack.c.bf16 %v395_v46, %v391_v45  ;;  %v819_v26 = vld [vmem:[#allocation8 + $0x70] sm:$0xff]  ;;  %v828_v41 = vld [vmem:[#allocation8 + $0xb8] sm:$0xff] }
  0x8a   :  { %252 = vmatmul.mubr.f32.gmra.mrb[6].mxu0 %v107_v52  ;;  %1823 = vmatpush1.bf16.msra.mxu1 %v1822_v44  ;;  %v1870_v34 = vpack.c.bf16 %v819_v26, %v817_v25  ;;  %v823_v37 = vld [vmem:[#allocation8 + $0x90] sm:$0xff]  ;;  %v1876_v46 = vpack.c.bf16 %v828_v41, %v826_v40  ;;  %v845_v40 = vld [vmem:[#allocation8 + $0x140] sm:$0xff] }
  0x8b   :  { %256 = vmatprep.mubr.f32.mxu0 %v110_v54  ;;  %1839 = vmatpush1.bf16.msra.mxu0 %v1838_v53  ;;  %v2431_v53 = vld [vmem:[%s2750_s2] ss:$0 sm:$0xff]  ;;  %v1874_v45 = vpack.c.bf16 %v823_v37, %v821_v36  ;;  %v827_v49 = vld [vmem:[#allocation8 + $0xb0] sm:$0xff] }
  0x8c   :  { %1841 = vmatprep.subr.bf16.mxu0 %v1840_v55  ;;  %1857 = vmatprep.subr.bf16.mxu1 %v1856_v51  ;;  %v847_v41 = vld [vmem:[#allocation8 + $0x150] sm:$0xff] }
  0x8e   :  { %257 = vmatmul.mubr.f32.gmra.mrb[8].mxu0 %v109_v60  ;;  %v810_v60 = vld [vmem:[#allocation8 + $0x28] sm:$0xff] }
  0x8f   :  { %261 = vmatprep.mubr.f32.mxu0 %v112_v62  ;;  %1843 = vmatpush1.bf16.msra.mxu0 %v1842_v61  ;;  %v812_v61 = vld [vmem:[#allocation8 + $0x38] sm:$0xff] }
  0x90   :  { %1845 = vmatprep.subr.bf16.mxu0 %v1844_v63 }
  0x92   :  { %262 = vmatmul.mubr.f32.gmra.mrb[10].mxu0 %v111_v2  ;;  %v1860_v2 = vpack.c.bf16 %v812_v61, %v810_v60  ;;  %v829_v60 = vld [vmem:[#allocation8 + $0xc0] sm:$0xff]  ;;  %v831_v61 = vld [vmem:[#allocation8 + $0xd0] sm:$0xff] }
  0x93   :  { %266 = vmatprep.mubr.f32.mxu0 %v114_v4  ;;  %1847 = vmatpush1.bf16.msra.mxu0 %v1846_v3  ;;  %v809_v3 = vld [vmem:[#allocation8 + $0x20] sm:$0xff]  ;;  %v811_v4 = vld [vmem:[#allocation8 + $0x30] sm:$0xff] }
  0x94   :  { %1849 = vmatprep.subr.bf16.mxu0 %v1848_v31 }
  0x96   :  { %267 = vmatmul.mubr.f32.gmra.mrb[12].mxu0 %v113_v5 }
  0x97   :  { %271 = vmatprep.mubr.f32.mxu0 %v116_v6  ;;  %1851 = vmatpush1.bf16.msra.mxu0 %v1850_v35  ;;  %v1872_v35 = vpack.c.bf16 %v824_v30, %v822_v29  ;;  %v841_v29 = vld [vmem:[#allocation8 + $0x120] sm:$0xff]  ;;  %v843_v30 = vld [vmem:[#allocation8 + $0x130] sm:$0xff] }
  0x98   :  { %1853 = vmatprep.subr.bf16.mxu0 %v1852_v43 }
  0x9a   :  { %272 = vmatmul.mubr.f32.gmra.mrb[14].mxu0 %v115_v7  ;;  %v814_v7 = vld [vmem:[#allocation8 + $0x48] sm:$0xff] }
  0x9b   :  { %276 = vmatprep.mubr.f32.mxu0 %v118_v8  ;;  %1855 = vmatpush1.bf16.msra.mxu0 %v1854_v47  ;;  %v816_v8 = vld [vmem:[#allocation8 + $0x58] sm:$0xff]  ;;  %v825_v47 = vld [vmem:[#allocation8 + $0xa0] sm:$0xff] }
  0x9e   :  { %277 = vmatmul.mubr.f32.gmra.mrb[16].mxu0 %v117_v9 }
  0x9f   :  { %281 = vmatprep.mubr.f32.mxu0 %v120_v10 }
  0xa2   :  { %282 = vmatmul.mubr.f32.gmra.mrb[18].mxu0 %v119_v11 }
  0xa3   :  { %286 = vmatprep.mubr.f32.mxu0 %v122_v12  ;;  %v1862_v12 = vpack.c.bf16 %v811_v4, %v809_v3 }
  0xa6   :  { %287 = vmatmul.mubr.f32.gmra.mrb[20].mxu0 %v121_v13  ;;  %v1864_v13 = vpack.c.bf16 %v816_v8, %v814_v7  ;;  %v833_v7 = vld [vmem:[#allocation8 + $0xe0] sm:$0xff]  ;;  %v835_v8 = vld [vmem:[#allocation8 + $0xf0] sm:$0xff] }
  0xa7   :  { %291 = vmatprep.mubr.f32.mxu0 %v124_v14  ;;  %v813_v14 = vld [vmem:[#allocation8 + $0x40] sm:$0xff] }
  0xaa   :  { %292 = vmatmul.mubr.f32.gmra.mrb[22].mxu0 %v123_v15  ;;  %v815_v15 = vld [vmem:[#allocation8 + $0x50] sm:$0xff] }
  0xab   :  { %296 = vmatprep.mubr.f32.mxu0 %v126_v16 }
  0xae   :  { %297 = vmatmul.mubr.f32.gmra.mrb[24].mxu0 %v125_v17 }
  0xaf   :  { %301 = vmatprep.mubr.f32.mxu0 %v128_v18  ;;  %v818_v18 = vld [vmem:[#allocation8 + $0x68] sm:$0xff] }
  0xb2   :  { %302 = vmatmul.mubr.f32.gmra.mrb[26].mxu0 %v127_v19  ;;  %v820_v19 = vld [vmem:[#allocation8 + $0x78] sm:$0xff] }
  0xb3   :  { %306 = vmatprep.mubr.f32.mxu0 %v130_v20  ;;  %v1868_v24 = vpack.c.bf16 %v820_v19, %v818_v18  ;;  %v837_v18 = vld [vmem:[#allocation8 + $0x100] sm:$0xff]  ;;  %v839_v19 = vld [vmem:[#allocation8 + $0x110] sm:$0xff] }
  0xb6   :  { %307 = vmatmul.mubr.f32.gmra.mrb[28].mxu0 %v129_v21 }
  0xb7   :  { %311 = vmatprep.mubr.f32.mxu0 %v132_v22 }
  0xba   :  { %312 = vmatmul.mubr.f32.gmra.mrb[30].mxu0 %v131_v23  ;;  %v1866_v23 = vpack.c.bf16 %v815_v15, %v813_v14 }
  0xbb   :  { %644 = vmatprep.mubr.f32.mxu0 %v2308_v48 }
 0x151   :  { %v1632_v52 = vpop.f32.mrb[0].mxu0 }
 0x152   :  { %v1633_v54 = vpop.f32.mrb[1].mxu0 }
 0x153   :  { %v1634_v55 = vadd.f32 %v1633_v54, %v1632_v52  ;;  %v830_v52 = vld [vmem:[#allocation8 + $0xc8] sm:$0xff]  ;;  %v832_v54 = vld [vmem:[#allocation8 + $0xd8] sm:$0xff] }
 0x155   :  { %v239_v58 = vadd.f32 %v1634_v55, %v2431_v53  ;;  %v1635_v59 = vpop.f32.mrb[2].mxu0 }
 0x156   :  { %v1636_v62 = vpop.f32.mrb[3].mxu0 }
 0x157   :  { %v317_v63 = vmax.f32 %v239_v58, 0.0  ;;  %v1637_v0 = vadd.f32 %v1636_v62, %v1635_v59  ;;  %v1878_v58 = vpack.c.bf16 %v827_v49, %v825_v47  ;;  %v1880_v59 = vpack.c.bf16 %v832_v54, %v830_v52  ;;  %v849_v52 = vld [vmem:[#allocation8 + $0x160] sm:$0xff]  ;;  %v851_v54 = vld [vmem:[#allocation8 + $0x170] sm:$0xff] }
 0x159   :  { %v244_v5 = vadd.f32 %v1637_v0, %v2431_v53  ;;  %v1638_v6 = vpop.f32.mrb[4].mxu0  ;;  %484 = vmatmul.mubr.f32.vlgmr.msra.gmra.mrb[0].mxu1 %v317_v63  ;;  %645 = vmatmul.mubr.f32.vlgmr.msra.gmra.mrb[32].mxu0 %v317_v63  ;;  %v834_v0 = vld [vmem:[#allocation8 + $0xe8] sm:$0xff] }
 0x15a   :  { %v1639_v9 = vpop.f32.mrb[5].mxu0  ;;  %489 = vmatprep.mubr.f32.mxu1 %v2308_v48  ;;  %650 = vmatprep.mubr.f32.mxu0 %v2308_v48 }
 0x15b   :  { %v318_v10 = vmax.f32 %v244_v5, 0.0  ;;  %v1640_v11 = vadd.f32 %v1639_v9, %v1638_v6  ;;  %1859 = vmatpush1.bf16.msra.mxu1 %v1858_v1  ;;  %v836_v1 = vld [vmem:[#allocation8 + $0xf8] sm:$0xff]  ;;  %v1882_v5 = vpack.c.bf16 %v831_v61, %v829_v60 }
 0x15c   :  { %1861 = vmatprep.subr.bf16.mxu1 %v1860_v2  ;;  %v1884_v6 = vpack.c.bf16 %v836_v1, %v834_v0  ;;  %v853_v0 = vld [vmem:[#allocation8 + $0x180] sm:$0xff]  ;;  %v855_v1 = vld [vmem:[#allocation8 + $0x190] sm:$0xff] }
 0x15d   :  { %v249_v16 = vadd.f32 %v1640_v11, %v2431_v53  ;;  %v1641_v17 = vpop.f32.mrb[6].mxu0  ;;  %490 = vmatmul.mubr.f32.gmra.mrb[2].mxu1 %v318_v10  ;;  %651 = vmatmul.mubr.f32.gmra.mrb[34].mxu0 %v318_v10  ;;  %v838_v11 = vld [vmem:[#allocation8 + $0x108] sm:$0xff] }
 0x15e   :  { %v1642_v20 = vpop.f32.mrb[7].mxu0  ;;  %495 = vmatprep.mubr.f32.mxu1 %v2308_v48  ;;  %656 = vmatprep.mubr.f32.mxu0 %v2308_v48 }
 0x15f   :  { %v319_v21 = vmax.f32 %v249_v16, 0.0  ;;  %v1643_v22 = vadd.f32 %v1642_v20, %v1641_v17  ;;  %1863 = vmatpush1.bf16.msra.mxu1 %v1862_v12  ;;  %v840_v12 = vld [vmem:[#allocation8 + $0x118] sm:$0xff]  ;;  %v1886_v16 = vpack.c.bf16 %v835_v8, %v833_v7 }
 0x160   :  { %1865 = vmatprep.subr.bf16.mxu1 %v1864_v13  ;;  %v1888_v17 = vpack.c.bf16 %v840_v12, %v838_v11  ;;  %v857_v11 = vld [vmem:[#allocation8 + $0x1a0] sm:$0xff]  ;;  %v859_v12 = vld [vmem:[#allocation8 + $0x1b0] sm:$0xff] }
 0x161   :  { %v254_v27 = vadd.f32 %v1643_v22, %v2431_v53  ;;  %v1644_v28 = vpop.f32.mrb[8].mxu0  ;;  %496 = vmatmul.mubr.f32.gmra.mrb[4].mxu1 %v319_v21  ;;  %657 = vmatmul.mubr.f32.gmra.mrb[36].mxu0 %v319_v21  ;;  %v842_v22 = vld [vmem:[#allocation8 + $0x128] sm:$0xff] }
 0x162   :  { %v1645_v31 = vpop.f32.mrb[9].mxu0  ;;  %501 = vmatprep.mubr.f32.mxu1 %v2308_v48  ;;  %662 = vmatprep.mubr.f32.mxu0 %v2308_v48 }
 0x163   :  { %v320_v32 = vmax.f32 %v254_v27, 0.0  ;;  %v1646_v33 = vadd.f32 %v1645_v31, %v1644_v28  ;;  %1867 = vmatpush1.bf16.msra.mxu1 %v1866_v23  ;;  %v844_v23 = vld [vmem:[#allocation8 + $0x138] sm:$0xff]  ;;  %v1890_v27 = vpack.c.bf16 %v839_v19, %v837_v18 }
 0x164   :  { %1869 = vmatprep.subr.bf16.mxu1 %v1868_v24  ;;  %v1892_v28 = vpack.c.bf16 %v844_v23, %v842_v22  ;;  %v861_v22 = vld [vmem:[#allocation8 + $0x1c0] sm:$0xff]  ;;  %v863_v23 = vld [vmem:[#allocation8 + $0x1d0] sm:$0xff] }
 0x165   :  { %v259_v38 = vadd.f32 %v1646_v33, %v2431_v53  ;;  %v1647_v39 = vpop.f32.mrb[10].mxu0  ;;  %502 = vmatmul.mubr.f32.gmra.mrb[6].mxu1 %v320_v32  ;;  %663 = vmatmul.mubr.f32.gmra.mrb[38].mxu0 %v320_v32  ;;  %v846_v33 = vld [vmem:[#allocation8 + $0x148] sm:$0xff] }
 0x166   :  { %v1648_v42 = vpop.f32.mrb[11].mxu0  ;;  %507 = vmatprep.mubr.f32.mxu1 %v2308_v48  ;;  %668 = vmatprep.mubr.f32.mxu0 %v2308_v48 }
 0x167   :  { %v321_v43 = vmax.f32 %v259_v38, 0.0  ;;  %v1649_v44 = vadd.f32 %v1648_v42, %v1647_v39  ;;  %1871 = vmatpush1.bf16.msra.mxu1 %v1870_v34  ;;  %v848_v34 = vld [vmem:[#allocation8 + $0x158] sm:$0xff]  ;;  %v1894_v38 = vpack.c.bf16 %v843_v30, %v841_v29  ;;  %v1914_v29 = vpack.c.bf16 %v863_v23, %v861_v22 }
 0x168   :  { %1873 = vmatprep.subr.bf16.mxu1 %v1872_v35  ;;  %v1896_v39 = vpack.c.bf16 %v848_v34, %v846_v33  ;;  %v868_v33 = vld [vmem:[#allocation8 + $0x1f8] sm:$0xff] }
 0x169   :  { %v264_v50 = vadd.f32 %v1649_v44, %v2431_v53  ;;  %v1650_v51 = vpop.f32.mrb[12].mxu0  ;;  %508 = vmatmul.mubr.f32.gmra.mrb[8].mxu1 %v321_v43  ;;  %669 = vmatmul.mubr.f32.gmra.mrb[40].mxu0 %v321_v43  ;;  %v850_v44 = vld [vmem:[#allocation8 + $0x168] sm:$0xff] }
 0x16a   :  { %v1651_v55 = vpop.f32.mrb[13].mxu0  ;;  %513 = vmatprep.mubr.f32.mxu1 %v2308_v48  ;;  %674 = vmatprep.mubr.f32.mxu0 %v2308_v48 }
 0x16b   :  { %v322_v56 = vmax.f32 %v264_v50, 0.0  ;;  %v1652_v57 = vadd.f32 %v1651_v55, %v1650_v51  ;;  %1875 = vmatpush1.bf16.msra.mxu1 %v1874_v45  ;;  %v852_v45 = vld [vmem:[#allocation8 + $0x178] sm:$0xff]  ;;  %v1898_v50 = vpack.c.bf16 %v847_v41, %v845_v40  ;;  %v399_v40 = vlaneseq }
 0x16c   :  { %1877 = vmatprep.subr.bf16.mxu1 %v1876_v46  ;;  %v1900_v51 = vpack.c.bf16 %v852_v45, %v850_v44 }
 0x16d   :  { %v269_v62 = vadd.f32 %v1652_v57, %v2431_v53  ;;  %v1653_v63 = vpop.f32.mrb[14].mxu0  ;;  %514 = vmatmul.mubr.f32.gmra.mrb[10].mxu1 %v322_v56  ;;  %675 = vmatmul.mubr.f32.gmra.mrb[42].mxu0 %v322_v56  ;;  %v854_v57 = vld [vmem:[#allocation8 + $0x188] sm:$0xff]  ;;  %v2479_v41 = vshrl.u32 %v399_v40, 7 }
 0x16e   :  { %v1654_v2 = vpop.f32.mrb[15].mxu0  ;;  %519 = vmatprep.mubr.f32.mxu1 %v2308_v48  ;;  %680 = vmatprep.mubr.f32.mxu0 %v2308_v48 }
 0x16f   :  { %v323_v3 = vmax.f32 %v269_v62, 0.0  ;;  %v1655_v4 = vadd.f32 %v1654_v2, %v1653_v63  ;;  %1879 = vmatpush1.bf16.msra.mxu1 %v1878_v58  ;;  %v856_v58 = vld [vmem:[#allocation8 + $0x198] sm:$0xff]  ;;  %v1902_v62 = vpack.c.bf16 %v851_v54, %v849_v52  ;;  %v869_v52 = vld [vmem:[#allocation8 + $0x200] sm:$0xff]  ;;  %v871_v54 = vld [vmem:[#allocation8 + $0x210] sm:$0xff] }
 0x170   :  { %1881 = vmatprep.subr.bf16.mxu1 %v1880_v59  ;;  %v1904_v63 = vpack.c.bf16 %v856_v58, %v854_v57  ;;  %v876_v57 = vld [vmem:[#allocation8 + $0x238] sm:$0xff]  ;;  %v873_v58 = vld [vmem:[#allocation8 + $0x220] sm:$0xff] }
 0x171   :  { %v274_v9 = vadd.f32 %v1655_v4, %v2431_v53  ;;  %v1656_v10 = vpop.f32.mrb[16].mxu0  ;;  %520 = vmatmul.mubr.f32.gmra.mrb[12].mxu1 %v323_v3  ;;  %681 = vmatmul.mubr.f32.gmra.mrb[44].mxu0 %v323_v3  ;;  %v858_v4 = vld [vmem:[#allocation8 + $0x1a8] sm:$0xff] }
 0x172   :  { %v1657_v13 = vpop.f32.mrb[17].mxu0  ;;  %525 = vmatprep.mubr.f32.mxu1 %v2308_v48  ;;  %686 = vmatprep.mubr.f32.mxu0 %v2308_v48 }
 0x173   :  { %v324_v14 = vmax.f32 %v274_v9, 0.0  ;;  %v1658_v15 = vadd.f32 %v1657_v13, %v1656_v10  ;;  %1883 = vmatpush1.bf16.msra.mxu1 %v1882_v5  ;;  %v860_v5 = vld [vmem:[#allocation8 + $0x1b8] sm:$0xff]  ;;  %v1906_v9 = vpack.c.bf16 %v855_v1, %v853_v0 }
 0x174   :  { %1885 = vmatprep.subr.bf16.mxu1 %v1884_v6  ;;  %v1908_v10 = vpack.c.bf16 %v860_v5, %v858_v4  ;;  %v1300_v5 = vld [vmem:[#allocation10 + $0x8] sm:$0xff] }
 0x175   :  { %v279_v20 = vadd.f32 %v1658_v15, %v2431_v53  ;;  %v1659_v21 = vpop.f32.mrb[18].mxu0  ;;  %526 = vmatmul.mubr.f32.gmra.mrb[14].mxu1 %v324_v14  ;;  %687 = vmatmul.mubr.f32.gmra.mrb[46].mxu0 %v324_v14  ;;  %v862_v15 = vld [vmem:[#allocation8 + $0x1c8] sm:$0xff] }
 0x176   :  { %v1660_v24 = vpop.f32.mrb[19].mxu0  ;;  %531 = vmatprep.mubr.f32.mxu1 %v2308_v48  ;;  %692 = vmatprep.mubr.f32.mxu0 %v2308_v48 }
 0x177   :  { %v325_v25 = vmax.f32 %v279_v20, 0.0  ;;  %v1661_v26 = vadd.f32 %v1660_v24, %v1659_v21  ;;  %1887 = vmatpush1.bf16.msra.mxu1 %v1886_v16  ;;  %v864_v16 = vld [vmem:[#allocation8 + $0x1d8] sm:$0xff]  ;;  %v1910_v20 = vpack.c.bf16 %v859_v12, %v857_v11 }
 0x178   :  { %1889 = vmatprep.subr.bf16.mxu1 %v1888_v17  ;;  %v1912_v21 = vpack.c.bf16 %v864_v16, %v862_v15  ;;  %v1302_v15 = vld [vmem:[#allocation10 + $0x18] sm:$0xff] }
 0x179   :  { %v284_v31 = vadd.f32 %v1661_v26, %v2431_v53  ;;  %v1662_v32 = vpop.f32.mrb[20].mxu0  ;;  %532 = vmatmul.mubr.f32.gmra.mrb[16].mxu1 %v325_v25  ;;  %693 = vmatmul.mubr.f32.gmra.mrb[48].mxu0 %v325_v25 }
 0x17a   :  { %v1663_v35 = vpop.f32.mrb[21].mxu0  ;;  %537 = vmatprep.mubr.f32.mxu1 %v2308_v48  ;;  %698 = vmatprep.mubr.f32.mxu0 %v2308_v48 }
 0x17b   :  { %v326_v36 = vmax.f32 %v284_v31, 0.0  ;;  %v1664_v37 = vadd.f32 %v1663_v35, %v1662_v32  ;;  %1891 = vmatpush1.bf16.msra.mxu1 %v1890_v27  ;;  %v866_v32 = vld [vmem:[#allocation8 + $0x1e8] sm:$0xff]  ;;  %v865_v35 = vld [vmem:[#allocation8 + $0x1e0] sm:$0xff] }
 0x17c   :  { %1893 = vmatprep.subr.bf16.mxu1 %v1892_v28  ;;  %v1916_v34 = vpack.c.bf16 %v868_v33, %v866_v32 }
 0x17d   :  { %v289_v42 = vadd.f32 %v1664_v37, %v2431_v53  ;;  %v1665_v43 = vpop.f32.mrb[22].mxu0  ;;  %538 = vmatmul.mubr.f32.gmra.mrb[18].mxu1 %v326_v36  ;;  %699 = vmatmul.mubr.f32.gmra.mrb[50].mxu0 %v326_v36  ;;  %v867_v36 = vld [vmem:[#allocation8 + $0x1f0] sm:$0xff] }
 0x17e   :  { %v1666_v46 = vpop.f32.mrb[23].mxu0  ;;  %543 = vmatprep.mubr.f32.mxu1 %v2308_v48  ;;  %704 = vmatprep.mubr.f32.mxu0 %v2308_v48  ;;  %v1918_v37 = vpack.c.bf16 %v867_v36, %v865_v35  ;;  %v879_v35 = vld [vmem:[#allocation8 + $0x250] sm:$0xff] }
 0x17f   :  { %v327_v47 = vmax.f32 %v289_v42, 0.0  ;;  %v1667_v49 = vadd.f32 %v1666_v46, %v1665_v43  ;;  %1895 = vmatpush1.bf16.msra.mxu1 %v1894_v38  ;;  %v870_v38 = vld [vmem:[#allocation8 + $0x208] sm:$0xff]  ;;  %v2485_v42 = vld [vmem:[%s2752_s4] sm:$0xf]  ;;  %v405_v43 = vsub.s32 1, %v2479_v41  ;;  %v1321_v36 = vld [vmem:[#allocation10 + $0xb0] sm:$0xff] }
 0x180   :  { %1897 = vmatprep.subr.bf16.mxu1 %v1896_v39 }
 0x181   :  { %v294_v55 = vadd.f32 %v1667_v49, %v2431_v53  ;;  %v1668_v56 = vpop.f32.mrb[24].mxu0  ;;  %544 = vmatmul.mubr.f32.gmra.mrb[20].mxu1 %v327_v47  ;;  %705 = vmatmul.mubr.f32.gmra.mrb[52].mxu0 %v327_v47  ;;  %v2496_v45 = vrot.slane %v2485_v42, %v405_v43 }
 0x182   :  { %v1669_v59 = vpop.f32.mrb[25].mxu0  ;;  %549 = vmatprep.mubr.f32.mxu1 %v2308_v48  ;;  %710 = vmatprep.mubr.f32.mxu0 %v2308_v48 }
 0x183   :  { %v328_v60 = vmax.f32 %v294_v55, 0.0  ;;  %v1670_v61 = vadd.f32 %v1669_v59, %v1668_v56  ;;  %1899 = vmatpush1.bf16.msra.mxu1 %v1898_v50  ;;  %v874_v56 = vld [vmem:[#allocation8 + $0x228] sm:$0xff]  ;;  %v875_v59 = vld [vmem:[#allocation8 + $0x230] sm:$0xff] }
 0x184   :  { %1901 = vmatprep.subr.bf16.mxu1 %v1900_v51  ;;  %v1924_v11 = vpack.c.bf16 %v876_v57, %v874_v56  ;;  %v1305_v56 = vld [vmem:[#allocation10 + $0x30] sm:$0xff]  ;;  %v1306_v57 = vld [vmem:[#allocation10 + $0x38] sm:$0xff] }
 0x185   :  { %v299_v2 = vadd.f32 %v1670_v61, %v2431_v53  ;;  %v1671_v3 = vpop.f32.mrb[26].mxu0  ;;  %550 = vmatmul.mubr.f32.gmra.mrb[22].mxu1 %v328_v60  ;;  %711 = vmatmul.mubr.f32.gmra.mrb[54].mxu0 %v328_v60  ;;  %v1315_v60 = vld [vmem:[#allocation10 + $0x80] sm:$0xff]  ;;  %v1316_v61 = vld [vmem:[#allocation10 + $0x88] sm:$0xff] }
 0x186   :  { %v1672_v6 = vpop.f32.mrb[27].mxu0  ;;  %555 = vmatprep.mubr.f32.mxu1 %v2308_v48  ;;  %716 = vmatprep.mubr.f32.mxu0 %v2308_v48  ;;  %v1984_v4 = vpack.c.bf16 %v1316_v61, %v1315_v60 }
 0x187   :  { %v329_v7 = vmax.f32 %v299_v2, 0.0  ;;  %v1673_v8 = vadd.f32 %v1672_v6, %v1671_v3  ;;  %1903 = vmatpush1.bf16.msra.mxu1 %v1902_v62  ;;  %v1299_v62 = vld [vmem:[#allocation10] sm:$0xff]  ;;  %v1922_v2 = vpack.c.bf16 %v871_v54, %v869_v52  ;;  %v2506_v3 = vld [vmem:[#allocation8 + $0x248] sm:$0xff]  ;;  %v1317_v6 = vld [vmem:[#allocation10 + $0x90] sm:$0xff] }
 0x188   :  { %1905 = vmatprep.subr.bf16.mxu1 %v1904_v63  ;;  %v1986_v12 = vpack.c.bf16 %v1300_v5, %v1299_v62  ;;  %1985 = vmatprep.subr.bf16.mxu0 %v1984_v4  ;;  %v881_v54 = vld [vmem:[#allocation8 + $0x260] sm:$0xff]  ;;  %v886_v4 = vld [vmem:[#allocation8 + $0x288] sm:$0xff]  ;;  %v888_v5 = vld [vmem:[#allocation8 + $0x298] sm:$0xff] }
 0x189   :  { %v304_v13 = vadd.f32 %v1673_v8, %v2431_v53  ;;  %v1674_v14 = vpop.f32.mrb[28].mxu0  ;;  %556 = vmatmul.mubr.f32.gmra.mrb[24].mxu1 %v329_v7  ;;  %717 = vmatmul.mubr.f32.gmra.mrb[56].mxu0 %v329_v7 }
 0x18a   :  { %v1675_v17 = vpop.f32.mrb[29].mxu0  ;;  %561 = vmatprep.mubr.f32.mxu1 %v2308_v48  ;;  %722 = vmatprep.mubr.f32.mxu0 %v2308_v48 }
 0x18b   :  { %v330_v18 = vmax.f32 %v304_v13, 0.0  ;;  %v1676_v19 = vadd.f32 %v1675_v17, %v1674_v14  ;;  %1907 = vmatpush1.bf16.msra.mxu1 %v1906_v9  ;;  %v1318_v13 = vld [vmem:[#allocation10 + $0x98] sm:$0xff]  ;;  %v1301_v14 = vld [vmem:[#allocation10 + $0x10] sm:$0xff]  ;;  %1987 = vmatpush3.bf16.msra.mxu0 %v1986_v12  ;;  %v885_v12 = vld [vmem:[#allocation8 + $0x280] sm:$0xff] }
 0x18c   :  { %1909 = vmatprep.subr.bf16.mxu1 %v1908_v10  ;;  %v880_v17 = vld [vmem:[#allocation8 + $0x258] sm:$0xff] }
 0x18d   :  { %v309_v24 = vadd.f32 %v1676_v19, %v2431_v53  ;;  %v1677_v25 = vpop.f32.mrb[30].mxu0  ;;  %562 = vmatmul.mubr.f32.gmra.mrb[26].mxu1 %v330_v18  ;;  %723 = vmatmul.mubr.f32.gmra.mrb[58].mxu0 %v330_v18  ;;  %v1988_v18 = vpack.c.bf16 %v1318_v13, %v1317_v6  ;;  %v1319_v19 = vld [vmem:[#allocation10 + $0xa0] sm:$0xff]  ;;  %v1998_v6 = vpack.c.bf16 %v1306_v57, %v1305_v56  ;;  %v894_v56 = vld [vmem:[#allocation8 + $0x2c8] sm:$0xff]  ;;  %v896_v57 = vld [vmem:[#allocation8 + $0x2d8] sm:$0xff] }
 0x18e   :  { %v1678_v26 = vpop.f32.mrb[31].mxu0  ;;  %567 = vmatprep.mubr.f32.mxu1 %v2308_v48  ;;  %728 = vmatprep.mubr.f32.mxu0 %v2308_v48 }
 0x18f   :  { %v331_v27 = vmax.f32 %v309_v24, 0.0  ;;  %v1679_v28 = vadd.f32 %v1678_v26, %v1677_v25  ;;  %1911 = vmatpush1.bf16.msra.mxu1 %v1910_v20  ;;  %v1320_v20 = vld [vmem:[#allocation10 + $0xa8] sm:$0xff]  ;;  %v1926_v25 = vpack.c.bf16 %v875_v59, %v873_v58  ;;  %v877_v26 = vld [vmem:[#allocation8 + $0x240] sm:$0xff]  ;;  %1989 = vmatprep.subr.bf16.mxu0 %v1988_v18 }
 0x190   :  { %1913 = vmatprep.subr.bf16.mxu1 %v1912_v21  ;;  %v1990_v21 = vpack.c.bf16 %v1302_v15, %v1301_v14  ;;  %v1930_v52 = vpack.c.bf16 %v879_v35, %v877_v26  ;;  %v1307_v14 = vld [vmem:[#allocation10 + $0x40] sm:$0xff]  ;;  %v1308_v15 = vld [vmem:[#allocation10 + $0x48] sm:$0xff] }
 0x191   :  { %v314_v30 = vadd.f32 %v1679_v28, %v2431_v53  ;;  %568 = vmatmul.mubr.f32.gmra.mrb[28].mxu1 %v331_v27  ;;  %729 = vmatmul.mubr.f32.gmra.mrb[60].mxu0 %v331_v27  ;;  %v872_v53 = vld [vmem:[#allocation8 + $0x218] sm:$0xff]  ;;  %v1992_v27 = vpack.c.bf16 %v1320_v20, %v1319_v19  ;;  %v1303_v28 = vld [vmem:[#allocation10 + $0x20] sm:$0xff]  ;;  %v1936_v20 = vpack.c.bf16 %v888_v5, %v886_v4  ;;  %v890_v26 = vld [vmem:[#allocation8 + $0x2a8] sm:$0xff] }
 0x192   :  { %573 = vmatprep.mubr.f32.mxu1 %v2308_v48  ;;  %734 = vmatprep.mubr.f32.mxu0 %v2308_v48  ;;  %v1920_v39 = vpack.c.bf16 %v872_v53, %v870_v38  ;;  %v401_v48 = vsub.s32 0, %v2479_v41  ;;  %v882_v53 = vld [vmem:[#allocation8 + $0x268] sm:$0xff] }
 0x193   :  { %v332_v31 = vmax.f32 %v314_v30, 0.0  ;;  %1915 = vmatpush1.bf16.msra.mxu1 %v1914_v29  ;;  %v1304_v29 = vld [vmem:[#allocation10 + $0x28] sm:$0xff]  ;;  %1991 = vmatpush3.bf16.msra.mxu0 %v1990_v21  ;;  %v887_v21 = vld [vmem:[#allocation8 + $0x290] sm:$0xff] }
 0x194   :  { %1917 = vmatprep.subr.bf16.mxu1 %v1916_v34  ;;  %v2491_v44 = vrot.slane %v2485_v42, %v401_v48  ;;  %v1928_v34 = vpack.c.bf16 %v880_v17, %v2506_v3  ;;  %v1994_v40 = vpack.c.bf16 %v1304_v29, %v1303_v28  ;;  %1993 = vmatprep.subr.bf16.mxu0 %v1992_v27  ;;  %v892_v27 = vld [vmem:[#allocation8 + $0x2b8] sm:$0xff]  ;;  %v1312_v4 = vld [vmem:[#allocation10 + $0x68] sm:$0xff] }
 0x195   :  { %574 = vmatmul.mubr.f32.gmra.mrb[30].mxu1 %v332_v31  ;;  %735 = vmatmul.mubr.f32.gmra.mrb[62].mxu0 %v332_v31  ;;  %v2002_v28 = vpack.c.bf16 %v1308_v15, %v1307_v14  ;;  %v1330_v14 = vld [vmem:[#allocation10 + $0xf8] sm:$0xff] }
 0x197   :  { %1919 = vmatpush1.bf16.msra.mxu1 %v1918_v37  ;;  %v1322_v37 = vld [vmem:[#allocation10 + $0xb8] sm:$0xff]  ;;  %1995 = vmatpush3.bf16.msra.mxu0 %v1994_v40 }
 0x198   :  { %1921 = vmatprep.subr.bf16.mxu1 %v1920_v39  ;;  %v884_v39 = vld [vmem:[#allocation8 + $0x278] sm:$0xff] }
 0x199   :  { %v1932_v62 = vpack.c.bf16 %v884_v39, %v882_v53 }
 0x22c   :  { %v485_v46 = vpop.f32.mrb[0].mxu1  ;;  %v2498_v47 = vpop.f32.mrb[32].mxu0 }
 0x22d   :  { %v486_v49 = vadd.f32 %v485_v46, %v2491_v44  ;;  %v487_v50 = vpop.f32.mrb[1].mxu1  ;;  %v2501_v51 = vpop.f32.mrb[33].mxu0 }
 0x22e   :  { %v488_v55 = vadd.f32 %v487_v50, %v2496_v45 }
 0x22f   :  { %v741_v7 = vmax.f32 %v486_v49, 0.0 }
 0x230   :  { %v742_v63 = vmax.f32 %v488_v55, 0.0  ;;  %v491_v0 = vpop.f32.mrb[2].mxu1  ;;  %v2504_v1 = vpop.f32.mrb[34].mxu0  ;;  %v1996_v55 = vpack.c.bf16 %v1322_v37, %v1321_v36  ;;  %v1309_v36 = vld [vmem:[#allocation10 + $0x50] sm:$0xff]  ;;  %v1310_v37 = vld [vmem:[#allocation10 + $0x58] sm:$0xff] }
 0x231   :  { %v492_v8 = vadd.f32 %v491_v0, %v2491_v44  ;;  %v493_v9 = vpop.f32.mrb[3].mxu1  ;;  %v2509_v10 = vpop.f32.mrb[35].mxu0  ;;  %v1323_v0 = vld [vmem:[#allocation10 + $0xc0] sm:$0xff] }
 0x232   :  { %v494_v16 = vadd.f32 %v493_v9, %v2496_v45  ;;  %1009 = vmatprep.mubr.f32.mxu1 %v742_v63  ;;  %v883_v63 = vld [vmem:[#allocation8 + $0x270] sm:$0xff]  ;;  %1997 = vmatprep.subr.bf16.mxu0 %v1996_v55 }
 0x233   :  { %1010 = vmatmul.mubr.f32.vlgmr.msra.gmra.mrb[32].mxu1 %v741_v7  ;;  %v745_v30 = vmax.f32 %v492_v8, 0.0  ;;  %1999 = vmatpush3.bf16.msra.mxu0 %v1998_v6 }
 0x234   :  { %v746_v22 = vmax.f32 %v494_v16, 0.0  ;;  %1923 = vmatpush1.bf16.msra.mxu1 %v1922_v2  ;;  %v497_v23 = vpop.f32.mrb[4].mxu1  ;;  %v2512_v24 = vpop.f32.mrb[36].mxu0  ;;  %v1324_v2 = vld [vmem:[#allocation10 + $0xc8] sm:$0xff] }
 0x235   :  { %v498_v31 = vadd.f32 %v497_v23, %v2491_v44  ;;  %v499_v32 = vpop.f32.mrb[5].mxu1  ;;  %v2515_v33 = vpop.f32.mrb[37].mxu0  ;;  %1925 = vmatprep.subr.bf16.mxu1 %v1924_v11  ;;  %v1934_v11 = vpack.c.bf16 %v883_v63, %v881_v54  ;;  %v2000_v13 = vpack.c.bf16 %v1324_v2, %v1323_v0  ;;  %v1326_v23 = vld [vmem:[#allocation10 + $0xd8] sm:$0xff]  ;;  %v1328_v54 = vld [vmem:[#allocation10 + $0xe8] sm:$0xff]  ;;  %v893_v0 = vld [vmem:[#allocation8 + $0x2c0] sm:$0xff] }
 0x236   :  { %v500_v38 = vadd.f32 %v499_v32, %v2496_v45  ;;  %1015 = vmatprep.mubr.f32.mxu1 %v746_v22  ;;  %v1325_v22 = vld [vmem:[#allocation10 + $0xd0] sm:$0xff]  ;;  %v1938_v32 = vpack.c.bf16 %v887_v21, %v885_v12 }
 0x237   :  { %1016 = vmatmul.mubr.f32.gmra.mrb[34].mxu1 %v745_v30  ;;  %v749_v58 = vmax.f32 %v498_v31, 0.0  ;;  %2001 = vmatprep.subr.bf16.mxu0 %v2000_v13  ;;  %v2004_v35 = vpack.c.bf16 %v1326_v23, %v1325_v22  ;;  %v895_v12 = vld [vmem:[#allocation8 + $0x2d0] sm:$0xff] }
 0x238   :  { %v750_v46 = vmax.f32 %v500_v38, 0.0  ;;  %1927 = vmatpush1.bf16.msra.mxu1 %v1926_v25  ;;  %v503_v49 = vpop.f32.mrb[6].mxu1  ;;  %v2519_v50 = vpop.f32.mrb[38].mxu0  ;;  %2003 = vmatpush3.bf16.msra.mxu0 %v2002_v28  ;;  %v1329_v13 = vld [vmem:[#allocation10 + $0xf0] sm:$0xff]  ;;  %v1946_v23 = vpack.c.bf16 %v895_v12, %v893_v0 }
 0x239   :  { %v504_v59 = vadd.f32 %v503_v49, %v2491_v44  ;;  %v505_v60 = vpop.f32.mrb[7].mxu1  ;;  %v2522_v61 = vpop.f32.mrb[39].mxu0  ;;  %1929 = vmatprep.subr.bf16.mxu1 %v1928_v34  ;;  %v889_v34 = vld [vmem:[#allocation8 + $0x2a0] sm:$0xff]  ;;  %v891_v49 = vld [vmem:[#allocation8 + $0x2b0] sm:$0xff]  ;;  %2005 = vmatprep.subr.bf16.mxu0 %v2004_v35 }
 0x23a   :  { %v506_v3 = vadd.f32 %v505_v60, %v2496_v45  ;;  %1021 = vmatprep.mubr.f32.mxu1 %v750_v46  ;;  %v1940_v46 = vpack.c.bf16 %v892_v27, %v890_v26  ;;  %v1942_v63 = vpack.c.bf16 %v891_v49, %v889_v34  ;;  %v1313_v26 = vld [vmem:[#allocation10 + $0x70] sm:$0xff]  ;;  %v1314_v27 = vld [vmem:[#allocation10 + $0x78] sm:$0xff]  ;;  %v897_v35 = vld [vmem:[#allocation8 + $0x2e0] sm:$0xff] }
 0x23b   :  { %1022 = vmatmul.mubr.f32.gmra.mrb[36].mxu1 %v749_v58  ;;  %v753_v16 = vmax.f32 %v504_v59, 0.0  ;;  %v2006_v58 = vpack.c.bf16 %v1310_v37, %v1309_v36  ;;  %v899_v36 = vld [vmem:[#allocation8 + $0x2f0] sm:$0xff] }
 0x23c   :  { %v754_v7 = vmax.f32 %v506_v3, 0.0  ;;  %1931 = vmatpush1.bf16.msra.mxu1 %v1930_v52  ;;  %v509_v8 = vpop.f32.mrb[8].mxu1  ;;  %v2525_v9 = vpop.f32.mrb[40].mxu0  ;;  %v1327_v52 = vld [vmem:[#allocation10 + $0xe0] sm:$0xff] }
 0x23d   :  { %v510_v17 = vadd.f32 %v509_v8, %v2491_v44  ;;  %v511_v18 = vpop.f32.mrb[9].mxu1  ;;  %v2528_v19 = vpop.f32.mrb[41].mxu0  ;;  %1933 = vmatprep.subr.bf16.mxu1 %v1932_v62  ;;  %v2008_v2 = vpack.c.bf16 %v1328_v54, %v1327_v52  ;;  %v1311_v3 = vld [vmem:[#allocation10 + $0x60] sm:$0xff]  ;;  %2007 = vmatpush3.bf16.msra.mxu0 %v2006_v58  ;;  %v1950_v54 = vpack.c.bf16 %v899_v36, %v897_v35 }
 0x23e   :  { %v512_v25 = vadd.f32 %v511_v18, %v2496_v45  ;;  %1027 = vmatprep.mubr.f32.mxu1 %v754_v7  ;;  %v2010_v18 = vpack.c.bf16 %v1312_v4, %v1311_v3  ;;  %v908_v3 = vld [vmem:[#allocation8 + $0x338] sm:$0xff]  ;;  %v909_v36 = vld [vmem:[#allocation8 + $0x340] sm:$0xff] }
 0x23f   :  { %1028 = vmatmul.mubr.f32.gmra.mrb[38].mxu1 %v753_v16  ;;  %v757_v38 = vmax.f32 %v510_v17, 0.0  ;;  %v898_v16 = vld [vmem:[#allocation8 + $0x2e8] sm:$0xff]  ;;  %v900_v17 = vld [vmem:[#allocation8 + $0x2f8] sm:$0xff]  ;;  %2009 = vmatprep.subr.bf16.mxu0 %v2008_v2 }
 0x240   :  { %v758_v29 = vmax.f32 %v512_v25, 0.0  ;;  %1935 = vmatpush1.bf16.msra.mxu1 %v1934_v11  ;;  %v515_v30 = vpop.f32.mrb[10].mxu1  ;;  %v2531_v31 = vpop.f32.mrb[42].mxu0  ;;  %v1944_v11 = vpack.c.bf16 %v896_v57, %v894_v56  ;;  %v2012_v25 = vpack.c.bf16 %v1330_v14, %v1329_v13  ;;  %v1948_v34 = vpack.c.bf16 %v900_v17, %v898_v16  ;;  %v906_v2 = vld [vmem:[#allocation8 + $0x328] sm:$0xff]  ;;  %v905_v16 = vld [vmem:[#allocation8 + $0x320] sm:$0xff]  ;;  %v907_v17 = vld [vmem:[#allocation8 + $0x330] sm:$0xff] }
 0x241   :  { %v516_v53 = vadd.f32 %v515_v30, %v2491_v44  ;;  %v517_v39 = vpop.f32.mrb[11].mxu1  ;;  %v2534_v40 = vpop.f32.mrb[43].mxu0  ;;  %1937 = vmatprep.subr.bf16.mxu1 %v1936_v20  ;;  %2011 = vmatpush3.bf16.msra.mxu0 %v2010_v18 }
 0x242   :  { %v518_v55 = vadd.f32 %v517_v39, %v2496_v45  ;;  %1033 = vmatprep.mubr.f32.mxu1 %v758_v29  ;;  %v2014_v39 = vpack.c.bf16 %v1314_v27, %v1313_v26  ;;  %2013 = vmatprep.subr.bf16.mxu0 %v2012_v25  ;;  %v1958_v27 = vpack.c.bf16 %v907_v17, %v905_v16 }
 0x243   :  { %1034 = vmatmul.mubr.f32.gmra.mrb[40].mxu1 %v757_v38  ;;  %v761_v5 = vmax.f32 %v516_v53, 0.0  ;;  %v902_v38 = vld [vmem:[#allocation8 + $0x308] sm:$0xff]  ;;  %v904_v53 = vld [vmem:[#allocation8 + $0x318] sm:$0xff] }
 0x244   :  { %v762_v59 = vmax.f32 %v518_v55, 0.0  ;;  %1939 = vmatpush1.bf16.msra.mxu1 %v1938_v32  ;;  %v521_v60 = vpop.f32.mrb[12].mxu1  ;;  %v2537_v62 = vpop.f32.mrb[44].mxu0 }
 0x245   :  { %v522_v6 = vadd.f32 %v521_v60, %v2491_v44  ;;  %v523_v7 = vpop.f32.mrb[13].mxu1  ;;  %v2540_v8 = vpop.f32.mrb[45].mxu0  ;;  %1941 = vmatprep.subr.bf16.mxu1 %v1940_v46  ;;  %v901_v60 = vld [vmem:[#allocation8 + $0x300] sm:$0xff]  ;;  %2015 = vmatpush3.bf16.msra.mxu0 %v2014_v39  ;;  %v916_v39 = vld [vmem:[#allocation8 + $0x378] sm:$0xff] }
 0x246   :  { %v524_v15 = vadd.f32 %v523_v7, %v2496_v45  ;;  %1039 = vmatprep.mubr.f32.mxu1 %v762_v59  ;;  %v1952_v59 = vpack.c.bf16 %v904_v53, %v902_v38  ;;  %v914_v53 = vld [vmem:[#allocation8 + $0x368] sm:$0xff] }
 0x247   :  { %1040 = vmatmul.mubr.f32.gmra.mrb[42].mxu1 %v761_v5  ;;  %v765_v28 = vmax.f32 %v522_v6, 0.0 }
 0x248   :  { %v766_v20 = vmax.f32 %v524_v15, 0.0  ;;  %1943 = vmatpush1.bf16.msra.mxu1 %v1942_v63  ;;  %v527_v21 = vpop.f32.mrb[14].mxu1  ;;  %v2543_v22 = vpop.f32.mrb[46].mxu0  ;;  %v903_v63 = vld [vmem:[#allocation8 + $0x310] sm:$0xff]  ;;  %v1956_v15 = vpack.c.bf16 %v908_v3, %v906_v2 }
 0x249   :  { %v528_v29 = vadd.f32 %v527_v21, %v2491_v44  ;;  %v529_v30 = vpop.f32.mrb[15].mxu1  ;;  %v2546_v32 = vpop.f32.mrb[47].mxu0  ;;  %1945 = vmatprep.subr.bf16.mxu1 %v1944_v11  ;;  %v1954_v7 = vpack.c.bf16 %v903_v63, %v901_v60  ;;  %v912_v21 = vld [vmem:[#allocation8 + $0x358] sm:$0xff]  ;;  %v1964_v63 = vpack.c.bf16 %v916_v39, %v914_v53  ;;  %v915_v2 = vld [vmem:[#allocation8 + $0x370] sm:$0xff] }
 0x24a   :  { %v530_v37 = vadd.f32 %v529_v30, %v2496_v45  ;;  %1045 = vmatprep.mubr.f32.mxu1 %v766_v20  ;;  %v910_v20 = vld [vmem:[#allocation8 + $0x348] sm:$0xff] }
 0x24b   :  { %1046 = vmatmul.mubr.f32.gmra.mrb[44].mxu1 %v765_v28  ;;  %v769_v55 = vmax.f32 %v528_v29, 0.0  ;;  %v1960_v35 = vpack.c.bf16 %v912_v21, %v910_v20  ;;  %v917_v21 = vld [vmem:[#allocation8 + $0x380] sm:$0xff] }
 0x24c   :  { %v770_v46 = vmax.f32 %v530_v37, 0.0  ;;  %1947 = vmatpush1.bf16.msra.mxu1 %v1946_v23  ;;  %v533_v49 = vpop.f32.mrb[16].mxu1  ;;  %v2549_v52 = vpop.f32.mrb[48].mxu0  ;;  %v911_v37 = vld [vmem:[#allocation8 + $0x350] sm:$0xff] }
 0x24d   :  { %v534_v56 = vadd.f32 %v533_v49, %v2491_v44  ;;  %v535_v57 = vpop.f32.mrb[17].mxu1  ;;  %v2552_v58 = vpop.f32.mrb[49].mxu0  ;;  %1949 = vmatprep.subr.bf16.mxu1 %v1948_v34 }
 0x24e   :  { %v536_v0 = vadd.f32 %v535_v57, %v2496_v45  ;;  %1051 = vmatprep.mubr.f32.mxu1 %v770_v46 }
 0x24f   :  { %1052 = vmatmul.mubr.f32.gmra.mrb[46].mxu1 %v769_v55  ;;  %v773_v11 = vmax.f32 %v534_v56, 0.0  ;;  %v1962_v55 = vpack.c.bf16 %v911_v37, %v909_v36 }
 0x250   :  { %v774_v4 = vmax.f32 %v536_v0, 0.0  ;;  %1951 = vmatpush1.bf16.msra.mxu1 %v1950_v54  ;;  %v539_v5 = vpop.f32.mrb[18].mxu1  ;;  %v2555_v6 = vpop.f32.mrb[50].mxu0  ;;  %v913_v0 = vld [vmem:[#allocation8 + $0x360] sm:$0xff] }
 0x251   :  { %v540_v12 = vadd.f32 %v539_v5, %v2491_v44  ;;  %v541_v13 = vpop.f32.mrb[19].mxu1  ;;  %v2558_v14 = vpop.f32.mrb[51].mxu0  ;;  %1953 = vmatprep.subr.bf16.mxu1 %v1952_v59  ;;  %v920_v5 = vld [vmem:[#allocation8 + $0x398] sm:$0xff] }
 0x252   :  { %v542_v18 = vadd.f32 %v541_v13, %v2496_v45  ;;  %1057 = vmatprep.mubr.f32.mxu1 %v774_v4  ;;  %v918_v4 = vld [vmem:[#allocation8 + $0x388] sm:$0xff]  ;;  %v1966_v13 = vpack.c.bf16 %v915_v2, %v913_v0 }
 0x253   :  { %1058 = vmatmul.mubr.f32.gmra.mrb[48].mxu1 %v773_v11  ;;  %v777_v28 = vmax.f32 %v540_v12, 0.0  ;;  %v1968_v20 = vpack.c.bf16 %v920_v5, %v918_v4  ;;  %v409_v5 = vsub.s32 2, %v2479_v41 }
 0x254   :  { %v778_v23 = vmax.f32 %v542_v18, 0.0  ;;  %1955 = vmatpush1.bf16.msra.mxu1 %v1954_v7  ;;  %v545_v25 = vpop.f32.mrb[20].mxu1  ;;  %v2561_v26 = vpop.f32.mrb[52].mxu0 }
 0x255   :  { %v546_v29 = vadd.f32 %v545_v25, %v2491_v44  ;;  %v547_v30 = vpop.f32.mrb[21].mxu1  ;;  %v2564_v34 = vpop.f32.mrb[53].mxu0  ;;  %1957 = vmatprep.subr.bf16.mxu1 %v1956_v15 }
 0x256   :  { %v548_v38 = vadd.f32 %v547_v30, %v2496_v45  ;;  %1063 = vmatprep.mubr.f32.mxu1 %v778_v23  ;;  %v919_v23 = vld [vmem:[#allocation8 + $0x390] sm:$0xff] }
 0x257   :  { %1064 = vmatmul.mubr.f32.gmra.mrb[50].mxu1 %v777_v28  ;;  %v781_v56 = vmax.f32 %v546_v29, 0.0  ;;  %v924_v28 = vld [vmem:[#allocation8 + $0x3b8] sm:$0xff]  ;;  %v1970_v36 = vpack.c.bf16 %v919_v23, %v917_v21 }
 0x258   :  { %v782_v46 = vmax.f32 %v548_v38, 0.0  ;;  %1959 = vmatpush1.bf16.msra.mxu1 %v1958_v27  ;;  %v551_v49 = vpop.f32.mrb[22].mxu1  ;;  %v2567_v54 = vpop.f32.mrb[54].mxu0  ;;  %v922_v27 = vld [vmem:[#allocation8 + $0x3a8] sm:$0xff] }
 0x259   :  { %v552_v57 = vadd.f32 %v551_v49, %v2491_v44  ;;  %v553_v59 = vpop.f32.mrb[23].mxu1  ;;  %v2570_v60 = vpop.f32.mrb[55].mxu0  ;;  %1961 = vmatprep.subr.bf16.mxu1 %v1960_v35  ;;  %v921_v49 = vld [vmem:[#allocation8 + $0x3a0] sm:$0xff] }
 0x25a   :  { %v554_v3 = vadd.f32 %v553_v59, %v2496_v45  ;;  %1069 = vmatprep.mubr.f32.mxu1 %v782_v46  ;;  %v1972_v46 = vpack.c.bf16 %v924_v28, %v922_v27  ;;  %v926_v59 = vld [vmem:[#allocation8 + $0x3c8] sm:$0xff]  ;;  %v932_v27 = vld [vmem:[#allocation8 + $0x3f8] sm:$0xff] }
 0x25b   :  { %1070 = vmatmul.mubr.f32.gmra.mrb[52].mxu1 %v781_v56  ;;  %v785_v15 = vmax.f32 %v552_v57, 0.0  ;;  %v413_v56 = vsub.s32 3, %v2479_v41 }
 0x25c   :  { %v786_v7 = vmax.f32 %v554_v3, 0.0  ;;  %1963 = vmatpush1.bf16.msra.mxu1 %v1962_v55  ;;  %v557_v11 = vpop.f32.mrb[24].mxu1  ;;  %v2573_v12 = vpop.f32.mrb[56].mxu0  ;;  %v923_v55 = vld [vmem:[#allocation8 + $0x3b0] sm:$0xff] }
 0x25d   :  { %v558_v16 = vadd.f32 %v557_v11, %v2491_v44  ;;  %v559_v17 = vpop.f32.mrb[25].mxu1  ;;  %v2576_v18 = vpop.f32.mrb[57].mxu0  ;;  %1965 = vmatprep.subr.bf16.mxu1 %v1964_v63  ;;  %v928_v63 = vld [vmem:[#allocation8 + $0x3d8] sm:$0xff]  ;;  %v1974_v4 = vpack.c.bf16 %v923_v55, %v921_v49  ;;  %v2593_v21 = vrot.slane %v2485_v42, %v413_v56  ;;  %v929_v56 = vld [vmem:[#allocation8 + $0x3e0] sm:$0xff] }
 0x25e   :  { %v560_v25 = vadd.f32 %v559_v17, %v2496_v45  ;;  %1075 = vmatprep.mubr.f32.mxu1 %v786_v7  ;;  %v925_v17 = vld [vmem:[#allocation8 + $0x3c0] sm:$0xff] }
 0x25f   :  { %1076 = vmatmul.mubr.f32.gmra.mrb[54].mxu1 %v785_v15  ;;  %v789_v37 = vmax.f32 %v558_v16, 0.0  ;;  %v1976_v16 = vpack.c.bf16 %v928_v63, %v926_v59  ;;  %v649_v59 = vadd.f32 %v2501_v51, %v2593_v21 }
 0x260   :  { %v790_v29 = vmax.f32 %v560_v25, 0.0  ;;  %1967 = vmatpush1.bf16.msra.mxu1 %v1966_v13  ;;  %v563_v30 = vpop.f32.mrb[26].mxu1  ;;  %v2579_v35 = vpop.f32.mrb[58].mxu0  ;;  %v930_v25 = vld [vmem:[#allocation8 + $0x3e8] sm:$0xff] }
 0x261   :  { %v564_v38 = vadd.f32 %v563_v30, %v2491_v44  ;;  %v565_v53 = vpop.f32.mrb[27].mxu1  ;;  %v2582_v39 = vpop.f32.mrb[59].mxu0  ;;  %1969 = vmatprep.subr.bf16.mxu1 %v1968_v20  ;;  %v927_v20 = vld [vmem:[#allocation8 + $0x3d0] sm:$0xff]  ;;  %v1980_v55 = vpack.c.bf16 %v932_v27, %v930_v25 }
 0x262   :  { %v566_v57 = vadd.f32 %v565_v53, %v2496_v45  ;;  %1081 = vmatprep.mubr.f32.mxu1 %v790_v29 }
 0x263   :  { %1082 = vmatmul.mubr.f32.gmra.mrb[56].mxu1 %v789_v37  ;;  %v793_v7 = vmax.f32 %v564_v38, 0.0  ;;  %v2599_v37 = vrot.slane %v2485_v42, %v409_v5  ;;  %v655_v5 = vadd.f32 %v2509_v10, %v2593_v21  ;;  %v667_v10 = vadd.f32 %v2522_v61, %v2593_v21 }
 0x264   :  { %v794_v0 = vmax.f32 %v566_v57, 0.0  ;;  %1971 = vmatpush1.bf16.msra.mxu1 %v1970_v36  ;;  %v569_v2 = vpop.f32.mrb[28].mxu1  ;;  %v2586_v3 = vpop.f32.mrb[60].mxu0  ;;  %v1978_v36 = vpack.c.bf16 %v927_v20, %v925_v17  ;;  %v931_v57 = vld [vmem:[#allocation8 + $0x3f0] sm:$0xff]  ;;  %v679_v61 = vadd.f32 %v2534_v40, %v2593_v21  ;;  %v691_v40 = vadd.f32 %v2546_v32, %v2593_v21 }
 0x265   :  { %v570_v11 = vadd.f32 %v569_v2, %v2491_v44  ;;  %v571_v13 = vpop.f32.mrb[29].mxu1  ;;  %v2590_v15 = vpop.f32.mrb[61].mxu0  ;;  %1973 = vmatprep.subr.bf16.mxu1 %v1972_v46  ;;  %v1982_v42 = vpack.c.bf16 %v931_v57, %v929_v56  ;;  %v756_v20 = vmax.f32 %v667_v10, 0.0  ;;  %v703_v32 = vadd.f32 %v2558_v14, %v2593_v21 }
 0x266   :  { %v572_v23 = vadd.f32 %v571_v13, %v2496_v45  ;;  %1087 = vmatprep.mubr.f32.mxu1 %v794_v0  ;;  %v659_v13 = vadd.f32 %v2512_v24, %v2599_v37  ;;  %v671_v24 = vadd.f32 %v2525_v9, %v2599_v37  ;;  %v683_v9 = vadd.f32 %v2537_v62, %v2599_v37 }
 0x267   :  { %1088 = vmatmul.mubr.f32.gmra.mrb[58].mxu1 %v793_v7  ;;  %v797_v38 = vmax.f32 %v570_v11, 0.0  ;;  %v748_v7 = vmax.f32 %v655_v5, 0.0  ;;  %v661_v11 = vadd.f32 %v2515_v33, %v2593_v21  ;;  %v673_v33 = vadd.f32 %v2528_v19, %v2593_v21 }
 0x268   :  { %v798_v28 = vmax.f32 %v572_v23, 0.0  ;;  %1975 = vmatpush1.bf16.msra.mxu1 %v1974_v4  ;;  %v575_v29 = vpop.f32.mrb[30].mxu1  ;;  %v2596_v30 = vpop.f32.mrb[62].mxu0  ;;  %v744_v4 = vmax.f32 %v649_v59, 0.0  ;;  %v751_v17 = vmax.f32 %v659_v13, 0.0  ;;  %v759_v27 = vmax.f32 %v671_v24, 0.0 }
 0x269   :  { %v576_v53 = vadd.f32 %v575_v29, %v2491_v44  ;;  %v577_v46 = vpop.f32.mrb[31].mxu1  ;;  %v2602_v49 = vpop.f32.mrb[63].mxu0  ;;  %1977 = vmatprep.subr.bf16.mxu1 %v1976_v16  ;;  %v647_v44 = vadd.f32 %v2498_v47, %v2599_v37  ;;  %v752_v16 = vmax.f32 %v661_v11, 0.0  ;;  %v760_v25 = vmax.f32 %v673_v33, 0.0 }
 0x26a   :  { %v578_v63 = vadd.f32 %v577_v46, %v2496_v45  ;;  %1093 = vmatprep.mubr.f32.mxu1 %v798_v28  ;;  %v653_v45 = vadd.f32 %v2504_v1, %v2599_v37  ;;  %v665_v1 = vadd.f32 %v2519_v50, %v2599_v37  ;;  %v677_v50 = vadd.f32 %v2531_v31, %v2599_v37 }
 0x26b   :  { %1094 = vmatmul.mubr.f32.gmra.mrb[60].mxu1 %v797_v38  ;;  %v801_v2 = vmax.f32 %v576_v53, 0.0  ;;  %v743_v51 = vmax.f32 %v647_v44, 0.0  ;;  %v764_v28 = vmax.f32 %v679_v61, 0.0  ;;  %v685_v19 = vadd.f32 %v2540_v8, %v2593_v21 }
 0x26c   :  { %v802_v0 = vmax.f32 %v578_v63, 0.0  ;;  %1979 = vmatpush1.bf16.msra.mxu1 %v1978_v36  ;;  %v747_v47 = vmax.f32 %v653_v45, 0.0  ;;  %v755_v23 = vmax.f32 %v665_v1, 0.0  ;;  %v763_v29 = vmax.f32 %v677_v50, 0.0 }
 0x26d   :  { %1981 = vmatprep.subr.bf16.mxu1 %v1980_v55  ;;  %v768_v36 = vmax.f32 %v685_v19, 0.0  ;;  %v767_v38 = vmax.f32 %v683_v9, 0.0  ;;  %v689_v31 = vadd.f32 %v2543_v22, %v2599_v37  ;;  %v772_v53 = vmax.f32 %v691_v40, 0.0 }
 0x26e   :  { %1099 = vmatprep.mubr.f32.mxu1 %v802_v0  ;;  %v697_v8 = vadd.f32 %v2552_v58, %v2593_v21  ;;  %v695_v62 = vadd.f32 %v2549_v52, %v2599_v37  ;;  %v701_v22 = vadd.f32 %v2555_v6, %v2599_v37  ;;  %v780_v57 = vmax.f32 %v703_v32, 0.0 }
 0x26f   :  { %1100 = vmatmul.mubr.f32.gmra.mrb[62].mxu1 %v801_v2  ;;  %v771_v46 = vmax.f32 %v689_v31, 0.0  ;;  %v709_v58 = vadd.f32 %v2564_v34, %v2593_v21  ;;  %v707_v52 = vadd.f32 %v2561_v26, %v2599_v37  ;;  %v715_v14 = vadd.f32 %v2570_v60, %v2593_v21 }
 0x270   :  { %1983 = vmatpush1.bf16.msra.mxu1 %v1982_v42  ;;  %1170 = vmatprep.mubr.f32.mxu1 %v744_v4  ;;  %v776_v55 = vmax.f32 %v697_v8, 0.0  ;;  %v775_v56 = vmax.f32 %v695_v62, 0.0  ;;  %v779_v59 = vmax.f32 %v701_v22, 0.0  ;;  %v713_v6 = vadd.f32 %v2567_v54, %v2599_v37 }
 0x271   :  { %v784_v63 = vmax.f32 %v709_v58, 0.0  ;;  %v783_v0 = vmax.f32 %v707_v52, 0.0  ;;  %v788_v42 = vmax.f32 %v715_v14, 0.0  ;;  %v721_v34 = vadd.f32 %v2576_v18, %v2593_v21 }
 0x272   :  { %v787_v44 = vmax.f32 %v713_v6, 0.0  ;;  %v719_v26 = vadd.f32 %v2573_v12, %v2599_v37  ;;  %v727_v60 = vadd.f32 %v2582_v39, %v2593_v21  ;;  %v725_v54 = vadd.f32 %v2579_v35, %v2599_v37 }
 0x273   :  { %1171 = vmatmul.mubr.f32.vlgmr.msra.gmra.mrb[32].mxu1 %v743_v51  ;;  %v792_v2 = vmax.f32 %v721_v34, 0.0  ;;  %v733_v18 = vadd.f32 %v2590_v15, %v2593_v21  ;;  %v731_v12 = vadd.f32 %v2586_v3, %v2599_v37  ;;  %v739_v39 = vadd.f32 %v2602_v49, %v2593_v21 }
 0x274   :  { %1176 = vmatprep.mubr.f32.mxu1 %v748_v7  ;;  %v791_v4 = vmax.f32 %v719_v26, 0.0  ;;  %v796_v5 = vmax.f32 %v727_v60, 0.0  ;;  %v795_v51 = vmax.f32 %v725_v54, 0.0  ;;  %v737_v35 = vadd.f32 %v2596_v30, %v2599_v37 }
 0x275   :  { %v800_v45 = vmax.f32 %v733_v18, 0.0  ;;  %v799_v7 = vmax.f32 %v731_v12, 0.0  ;;  %v804_v11 = vmax.f32 %v739_v39, 0.0 }
 0x276   :  { %v803_v15 = vmax.f32 %v737_v35, 0.0 }
 0x277   :  { %1177 = vmatmul.mubr.f32.gmra.mrb[34].mxu1 %v747_v47  ;;  %v933_v47 = vld [vmem:[%s2754_s6] sm:$0x3] }
 0x278   :  { %1182 = vmatprep.mubr.f32.mxu1 %v752_v16  ;;  %v2674_v3 = vrot.slane %v933_v47, %v401_v48  ;;  %v2678_v21 = vrot.slane %v933_v47, %v405_v43 }
 0x27b   :  { %1183 = vmatmul.mubr.f32.gmra.mrb[36].mxu1 %v751_v17 }
 0x27c   :  { %1188 = vmatprep.mubr.f32.mxu1 %v756_v20 }
 0x27f   :  { %1189 = vmatmul.mubr.f32.gmra.mrb[38].mxu1 %v755_v23 }
 0x280   :  { %1194 = vmatprep.mubr.f32.mxu1 %v760_v25 }
 0x283   :  { %1195 = vmatmul.mubr.f32.gmra.mrb[40].mxu1 %v759_v27 }
 0x284   :  { %1200 = vmatprep.mubr.f32.mxu1 %v764_v28 }
 0x287   :  { %1201 = vmatmul.mubr.f32.gmra.mrb[42].mxu1 %v763_v29 }
 0x288   :  { %1206 = vmatprep.mubr.f32.mxu1 %v768_v36 }
 0x28b   :  { %1207 = vmatmul.mubr.f32.gmra.mrb[44].mxu1 %v767_v38 }
 0x28c   :  { %1212 = vmatprep.mubr.f32.mxu1 %v772_v53 }
 0x28f   :  { %1213 = vmatmul.mubr.f32.gmra.mrb[46].mxu1 %v771_v46 }
 0x290   :  { %1218 = vmatprep.mubr.f32.mxu1 %v776_v55 }
 0x293   :  { %1219 = vmatmul.mubr.f32.gmra.mrb[48].mxu1 %v775_v56 }
 0x294   :  { %1224 = vmatprep.mubr.f32.mxu1 %v780_v57 }
 0x297   :  { %1225 = vmatmul.mubr.f32.gmra.mrb[50].mxu1 %v779_v59 }
 0x298   :  { %1230 = vmatprep.mubr.f32.mxu1 %v784_v63 }
 0x29b   :  { %1231 = vmatmul.mubr.f32.gmra.mrb[52].mxu1 %v783_v0 }
 0x29c   :  { %1236 = vmatprep.mubr.f32.mxu1 %v788_v42 }
 0x29f   :  { %1237 = vmatmul.mubr.f32.gmra.mrb[54].mxu1 %v787_v44 }
 0x2a0   :  { %1242 = vmatprep.mubr.f32.mxu1 %v792_v2 }
 0x2a3   :  { %1243 = vmatmul.mubr.f32.gmra.mrb[56].mxu1 %v791_v4 }
 0x2a4   :  { %1248 = vmatprep.mubr.f32.mxu1 %v796_v5 }
 0x2a7   :  { %1249 = vmatmul.mubr.f32.gmra.mrb[58].mxu1 %v795_v51 }
 0x2a8   :  { %1254 = vmatprep.mubr.f32.mxu1 %v800_v45 }
 0x2ab   :  { %1255 = vmatmul.mubr.f32.gmra.mrb[60].mxu1 %v799_v7 }
 0x2ac   :  { %1260 = vmatprep.mubr.f32.mxu1 %v804_v11 }
 0x2af   :  { %1261 = vmatmul.mubr.f32.gmra.mrb[62].mxu1 %v803_v15 }
 0x346   :  { %v1172_v49 = vpop.f32.mrb[32].mxu1 }
 0x347   :  { %v2016_v30 = vadd.f32 %v1172_v49, %v2674_v3  ;;  %v1174_v37 = vpop.f32.mrb[33].mxu1 }
 0x348   :  { %v2017_v13 = vadd.f32 %v1174_v37, %v2678_v21 }
 0x349   :  { %v1267_v17 = vmax.f32 %v2016_v30, 0.0 }
 0x34a   :  { %v1268_v16 = vmax.f32 %v2017_v13, 0.0  ;;  %v1178_v10 = vpop.f32.mrb[34].mxu1 }
 0x34b   :  { %v2018_v1 = vadd.f32 %v1178_v10, %v2674_v3  ;;  %v1180_v20 = vpop.f32.mrb[35].mxu1 }
 0x34c   :  { %v2019_v33 = vadd.f32 %v1180_v20, %v2678_v21  ;;  %1402 = vmatprep.mubr.f32.mxu0 %v1268_v16 }
 0x34d   :  { %1403 = vmatmul.mubr.f32.vlgmr.msra.gmra.mrb[64].mxu0 %v1267_v17  ;;  %v1269_v43 = vmax.f32 %v2018_v1, 0.0 }
 0x34e   :  { %v1270_v48 = vmax.f32 %v2019_v33, 0.0  ;;  %v1184_v41 = vpop.f32.mrb[36].mxu1 }
 0x34f   :  { %v2020_v23 = vadd.f32 %v1184_v41, %v2674_v3  ;;  %v1186_v24 = vpop.f32.mrb[37].mxu1 }
 0x350   :  { %v2021_v25 = vadd.f32 %v1186_v24, %v2678_v21  ;;  %1407 = vmatprep.mubr.f32.mxu0 %v1270_v48 }
 0x351   :  { %1408 = vmatmul.mubr.f32.gmra.mrb[66].mxu0 %v1269_v43  ;;  %v1271_v50 = vmax.f32 %v2020_v23, 0.0 }
 0x352   :  { %v1272_v61 = vmax.f32 %v2021_v25, 0.0  ;;  %v1190_v27 = vpop.f32.mrb[38].mxu1 }
 0x353   :  { %v2022_v28 = vadd.f32 %v1190_v27, %v2674_v3  ;;  %v1192_v19 = vpop.f32.mrb[39].mxu1 }
 0x354   :  { %v2023_v29 = vadd.f32 %v1192_v19, %v2678_v21  ;;  %1412 = vmatprep.mubr.f32.mxu0 %v1272_v61 }
 0x355   :  { %1413 = vmatmul.mubr.f32.gmra.mrb[68].mxu0 %v1271_v50  ;;  %v1273_v40 = vmax.f32 %v2022_v28, 0.0 }
 0x356   :  { %v1274_v9 = vmax.f32 %v2023_v29, 0.0  ;;  %v1196_v36 = vpop.f32.mrb[40].mxu1 }
 0x357   :  { %v2024_v38 = vadd.f32 %v1196_v36, %v2674_v3  ;;  %v1198_v31 = vpop.f32.mrb[41].mxu1 }
 0x358   :  { %v2025_v53 = vadd.f32 %v1198_v31, %v2678_v21  ;;  %1417 = vmatprep.mubr.f32.mxu0 %v1274_v9 }
 0x359   :  { %1418 = vmatmul.mubr.f32.gmra.mrb[70].mxu0 %v1273_v40  ;;  %v1275_v62 = vmax.f32 %v2024_v38, 0.0 }
 0x35a   :  { %v1276_v8 = vmax.f32 %v2025_v53, 0.0  ;;  %v1202_v46 = vpop.f32.mrb[42].mxu1 }
 0x35b   :  { %v2026_v55 = vadd.f32 %v1202_v46, %v2674_v3  ;;  %v1204_v32 = vpop.f32.mrb[43].mxu1 }
 0x35c   :  { %v2027_v56 = vadd.f32 %v1204_v32, %v2678_v21  ;;  %1422 = vmatprep.mubr.f32.mxu0 %v1276_v8 }
 0x35d   :  { %1423 = vmatmul.mubr.f32.gmra.mrb[72].mxu0 %v1275_v62  ;;  %v1277_v58 = vmax.f32 %v2026_v55, 0.0 }
 0x35e   :  { %v1278_v22 = vmax.f32 %v2027_v56, 0.0  ;;  %v1208_v57 = vpop.f32.mrb[44].mxu1 }
 0x35f   :  { %v2028_v59 = vadd.f32 %v1208_v57, %v2674_v3  ;;  %v1210_v52 = vpop.f32.mrb[45].mxu1  ;;  %v2715_v57 = vld [vmem:[%s2756_s8] ss:$0 sm:$0xff]  ;;  %s2309_s8 = smov [#allocation11]  }
 0x360   :  { %v2029_v63 = vadd.f32 %v1210_v52, %v2678_v21  ;;  %1427 = vmatprep.mubr.f32.mxu0 %v1278_v22  ;;  %s1584_s16 = sshll.u32 %s2309_s8, 4  ;;  %s1585_s16 = int_to_ptr.vmem [resolvable:$true] %s1584_s16 }
 0x361   :  { %1428 = vmatmul.mubr.f32.gmra.mrb[74].mxu0 %v1277_v58  ;;  %v1279_v6 = vmax.f32 %v2028_v59, 0.0  ;;  %s2267_s17 = scalar_lea.vmem %s1585_s16, 2048  ;;  %p2272_p13 = scmp.lt.s32.totalorder %s1585_s16, %s1585_s16 }
 0x362   :  { %v1280_v14 = vmax.f32 %v2029_v63, 0.0  ;;  %v1214_v0 = vpop.f32.mrb[46].mxu1  ;;  %p2268_p12 = scmp.ne.s32.totalorder %s1585_s16, %s2267_s17  ;;  %p2273_p0 = scmp.lt.s32.totalorder %s2267_s17, %s2267_s17 }
 0x363   :  { %v2030_v42 = vadd.f32 %v1214_v0, %v2674_v3  ;;  %v1216_v34 = vpop.f32.mrb[47].mxu1 }
 0x364   :  { %v2031_v44 = vadd.f32 %v1216_v34, %v2678_v21  ;;  %1432 = vmatprep.mubr.f32.mxu0 %v1280_v14  ;;  %p2274_p1 = por %p2273_p0, %p2272_p13 }
 0x365   :  { %1433 = vmatmul.mubr.f32.gmra.mrb[76].mxu0 %v1279_v6  ;;  %v1281_v60 = vmax.f32 %v2030_v42, 0.0 }
 0x366   :  { %v1282_v26 = vmax.f32 %v2031_v44, 0.0  ;;  %v1220_v2 = vpop.f32.mrb[48].mxu1  ;;  %p2275_p2 = pnand %p2274_p1, %p2268_p12 }
 0x367   :  { %v2032_v4 = vadd.f32 %v1220_v2, %v2674_v3  ;;  %v1222_v54 = vpop.f32.mrb[49].mxu1 }
 0x368   :  { %v2033_v5 = vadd.f32 %v1222_v54, %v2678_v21  ;;  %1437 = vmatprep.mubr.f32.mxu0 %v1282_v26 }
 0x369   :  { %1438 = vmatmul.mubr.f32.gmra.mrb[78].mxu0 %v1281_v60  ;;  %v1283_v12 = vmax.f32 %v2032_v4, 0.0 }
 0x36a   :  { %v1284_v18 = vmax.f32 %v2033_v5, 0.0  ;;  %v1226_v51 = vpop.f32.mrb[50].mxu1 }
 0x36b   :  { %v2034_v45 = vadd.f32 %v1226_v51, %v2674_v3  ;;  %v1228_v39 = vpop.f32.mrb[51].mxu1 }
 0x36c   :  { %v2035_v7 = vadd.f32 %v1228_v39, %v2678_v21  ;;  %1442 = vmatprep.mubr.f32.mxu0 %v1284_v18 }
 0x36d   :  { %1443 = vmatmul.mubr.f32.gmra.mrb[80].mxu0 %v1283_v12  ;;  %v1285_v15 = vmax.f32 %v2034_v45, 0.0 }
 0x36e   :  { %v1286_v35 = vmax.f32 %v2035_v7, 0.0  ;;  %v1232_v11 = vpop.f32.mrb[52].mxu1 }
 0x36f   :  { %v2036_v47 = vadd.f32 %v1232_v11, %v2674_v3  ;;  %v1234_v49 = vpop.f32.mrb[53].mxu1 }
 0x370   :  { %v2037_v30 = vadd.f32 %v1234_v49, %v2678_v21  ;;  %1447 = vmatprep.mubr.f32.mxu0 %v1286_v35 }
 0x371   :  { %1448 = vmatmul.mubr.f32.gmra.mrb[82].mxu0 %v1285_v15  ;;  %v1287_v16 = vmax.f32 %v2036_v47, 0.0 }
 0x372   :  { %v1288_v37 = vmax.f32 %v2037_v30, 0.0  ;;  %v1238_v13 = vpop.f32.mrb[54].mxu1 }
 0x373   :  { %v2038_v10 = vadd.f32 %v1238_v13, %v2674_v3  ;;  %v1240_v17 = vpop.f32.mrb[55].mxu1 }
 0x374   :  { %v2039_v1 = vadd.f32 %v1240_v17, %v2678_v21  ;;  %1452 = vmatprep.mubr.f32.mxu0 %v1288_v37 }
 0x375   :  { %1453 = vmatmul.mubr.f32.gmra.mrb[84].mxu0 %v1287_v16  ;;  %v1289_v48 = vmax.f32 %v2038_v10, 0.0 }
 0x376   :  { %v1290_v20 = vmax.f32 %v2039_v1, 0.0  ;;  %v1244_v33 = vpop.f32.mrb[56].mxu1 }
 0x377   :  { %v2040_v41 = vadd.f32 %v1244_v33, %v2674_v3  ;;  %v1246_v43 = vpop.f32.mrb[57].mxu1 }
 0x378   :  { %v2041_v23 = vadd.f32 %v1246_v43, %v2678_v21  ;;  %1457 = vmatprep.mubr.f32.mxu0 %v1290_v20 }
 0x379   :  { %1458 = vmatmul.mubr.f32.gmra.mrb[86].mxu0 %v1289_v48  ;;  %v1291_v61 = vmax.f32 %v2040_v41, 0.0 }
 0x37a   :  { %v1292_v24 = vmax.f32 %v2041_v23, 0.0  ;;  %v1250_v25 = vpop.f32.mrb[58].mxu1 }
 0x37b   :  { %v2042_v27 = vadd.f32 %v1250_v25, %v2674_v3  ;;  %v1252_v50 = vpop.f32.mrb[59].mxu1 }
 0x37c   :  { %v2043_v28 = vadd.f32 %v1252_v50, %v2678_v21  ;;  %1462 = vmatprep.mubr.f32.mxu0 %v1292_v24 }
 0x37d   :  { %1463 = vmatmul.mubr.f32.gmra.mrb[88].mxu0 %v1291_v61  ;;  %v1293_v9 = vmax.f32 %v2042_v27, 0.0 }
 0x37e   :  { %v1294_v19 = vmax.f32 %v2043_v28, 0.0  ;;  %v1256_v29 = vpop.f32.mrb[60].mxu1 }
 0x37f   :  { %v2044_v36 = vadd.f32 %v1256_v29, %v2674_v3  ;;  %v1258_v40 = vpop.f32.mrb[61].mxu1 }
 0x380   :  { %v2045_v38 = vadd.f32 %v1258_v40, %v2678_v21  ;;  %1467 = vmatprep.mubr.f32.mxu0 %v1294_v19 }
 0x381   :  { %1468 = vmatmul.mubr.f32.gmra.mrb[90].mxu0 %v1293_v9  ;;  %v1295_v8 = vmax.f32 %v2044_v36, 0.0 }
 0x382   :  { %v1296_v31 = vmax.f32 %v2045_v38, 0.0  ;;  %v1262_v53 = vpop.f32.mrb[62].mxu1 }
 0x383   :  { %v2046_v46 = vadd.f32 %v1262_v53, %v2674_v3  ;;  %v1264_v62 = vpop.f32.mrb[63].mxu1 }
 0x384   :  { %v2047_v55 = vadd.f32 %v1264_v62, %v2678_v21  ;;  %1472 = vmatprep.mubr.f32.mxu0 %v1296_v31 }
 0x385   :  { %1473 = vmatmul.mubr.f32.gmra.mrb[92].mxu0 %v1295_v8  ;;  %v1297_v56 = vmax.f32 %v2046_v46, 0.0 }
 0x386   :  { %v1298_v32 = vmax.f32 %v2047_v55, 0.0 }
 0x388   :  { %1477 = vmatprep.mubr.f32.mxu0 %v1298_v32 }
 0x389   :  { %1478 = vmatmul.mubr.f32.gmra.mrb[94].mxu0 %v1297_v56 }
 0x420   :  { %v1712_v22 = vpop.f32.mrb[64].mxu0 }
 0x421   :  { %v1713_v58 = vpop.f32.mrb[65].mxu0 }
 0x422   :  { %v1714_v59 = vadd.f32 %v1713_v58, %v1712_v22 }
 0x424   :  { %v1405_v52 = vadd.f32 %v1714_v59, %v2715_v57  ;;  %v1715_v3 = vpop.f32.mrb[66].mxu0 }
 0x425   :  { %v1716_v63 = vpop.f32.mrb[67].mxu0 }
 0x426   :  { %v1483_v14 = vsub.f32 0.0, %v1405_v52  ;;  %v1717_v21 = vadd.f32 %v1716_v63, %v1715_v3 }
 0x428   :  { %v1499_v0 = vmul.f32 1.442695, %v1483_v14  ;;  %v1410_v6 = vadd.f32 %v1717_v21, %v2715_v57  ;;  %v1718_v42 = vpop.f32.mrb[68].mxu0 }
 0x429   :  { %v1719_v34 = vpop.f32.mrb[69].mxu0 }
 0x42a   :  { %2093 = vpow2.f32 %v1499_v0  ;;  %v1484_v44 = vsub.f32 0.0, %v1410_v6  ;;  %v1720_v26 = vadd.f32 %v1719_v34, %v1718_v42 }
 0x42c   :  { %v1501_v2 = vmul.f32 1.442695, %v1484_v44  ;;  %v1415_v60 = vadd.f32 %v1720_v26, %v2715_v57  ;;  %v1721_v4 = vpop.f32.mrb[70].mxu0 }
 0x42d   :  { %v1722_v54 = vpop.f32.mrb[71].mxu0 }
 0x42e   :  { %2095 = vpow2.f32 %v1501_v2  ;;  %v1485_v5 = vsub.f32 0.0, %v1415_v60  ;;  %v1723_v18 = vadd.f32 %v1722_v54, %v1721_v4 }
 0x430   :  { %v1503_v51 = vmul.f32 1.442695, %v1485_v5  ;;  %v1420_v12 = vadd.f32 %v1723_v18, %v2715_v57  ;;  %v1724_v45 = vpop.f32.mrb[72].mxu0 }
 0x431   :  { %v1725_v39 = vpop.f32.mrb[73].mxu0 }
 0x432   :  { %2097 = vpow2.f32 %v1503_v51  ;;  %v1486_v7 = vsub.f32 0.0, %v1420_v12  ;;  %v1726_v35 = vadd.f32 %v1725_v39, %v1724_v45 }
 0x434   :  { %v2094_v11 = vpop.eup %2093  ;;  %v1505_v15 = vmul.f32 1.442695, %v1486_v7  ;;  %v1425_v47 = vadd.f32 %v1726_v35, %v2715_v57  ;;  %v1727_v49 = vpop.f32.mrb[74].mxu0 }
 0x435   :  { %v1531_v30 = vadd.f32 1.0, %v2094_v11  ;;  %v1728_v37 = vpop.f32.mrb[75].mxu0 }
 0x436   :  { %2099 = vpow2.f32 %v1505_v15  ;;  %v1487_v13 = vsub.f32 0.0, %v1425_v47  ;;  %v1729_v16 = vadd.f32 %v1728_v37, %v1727_v49 }
 0x437   :  { %2101 = vrcp.f32 %v1531_v30 }
 0x438   :  { %v2096_v10 = vpop.eup %2095  ;;  %v1507_v17 = vmul.f32 1.442695, %v1487_v13  ;;  %v1430_v1 = vadd.f32 %v1729_v16, %v2715_v57  ;;  %v1730_v20 = vpop.f32.mrb[76].mxu0 }
 0x439   :  { %v1532_v33 = vadd.f32 1.0, %v2096_v10  ;;  %v1731_v48 = vpop.f32.mrb[77].mxu0 }
 0x43a   :  { %2103 = vpow2.f32 %v1507_v17  ;;  %v1488_v41 = vsub.f32 0.0, %v1430_v1  ;;  %v1732_v43 = vadd.f32 %v1731_v48, %v1730_v20 }
 0x43b   :  { %2105 = vrcp.f32 %v1532_v33 }
 0x43c   :  { %v2098_v23 = vpop.eup %2097  ;;  %v1509_v24 = vmul.f32 1.442695, %v1488_v41  ;;  %v1435_v25 = vadd.f32 %v1732_v43, %v2715_v57  ;;  %v1733_v61 = vpop.f32.mrb[78].mxu0 }
 0x43d   :  { %v1533_v27 = vadd.f32 1.0, %v2098_v23  ;;  %v1734_v50 = vpop.f32.mrb[79].mxu0 }
 0x43e   :  { %2107 = vpow2.f32 %v1509_v24  ;;  %v1489_v28 = vsub.f32 0.0, %v1435_v25  ;;  %v1735_v19 = vadd.f32 %v1734_v50, %v1733_v61 }
 0x43f   :  { %2109 = vrcp.f32 %v1533_v27 }
 0x440   :  { %v2100_v29 = vpop.eup %2099  ;;  %v1511_v9 = vmul.f32 1.442695, %v1489_v28  ;;  %v1440_v36 = vadd.f32 %v1735_v19, %v2715_v57  ;;  %v1736_v40 = vpop.f32.mrb[80].mxu0 }
 0x441   :  { %v2102_v38 = vpop.eup %2101  ;;  %v1534_v31 = vadd.f32 1.0, %v2100_v29  ;;  %v1737_v53 = vpop.f32.mrb[81].mxu0 }
 0x442   :  { %1563 = vst [vmem:[#allocation11] sm:$0xff] %v2102_v38  ;;  %2111 = vpow2.f32 %v1511_v9  ;;  %v1490_v8 = vsub.f32 0.0, %v1440_v36  ;;  %v1738_v46 = vadd.f32 %v1737_v53, %v1736_v40 }
 0x443   :  { %2113 = vrcp.f32 %v1534_v31 }
 0x444   :  { %v2104_v62 = vpop.eup %2103  ;;  %v1513_v55 = vmul.f32 1.442695, %v1490_v8  ;;  %v1445_v32 = vadd.f32 %v1738_v46, %v2715_v57  ;;  %v1739_v56 = vpop.f32.mrb[82].mxu0 }
 0x445   :  { %v2106_v22 = vpop.eup %2105  ;;  %v1535_v58 = vadd.f32 1.0, %v2104_v62  ;;  %v1740_v59 = vpop.f32.mrb[83].mxu0 }
 0x446   :  { %1564 = vst [vmem:[#allocation11 + $0x8] sm:$0xff] %v2106_v22  ;;  %2115 = vpow2.f32 %v1513_v55  ;;  %v1491_v52 = vsub.f32 0.0, %v1445_v32  ;;  %v1741_v3 = vadd.f32 %v1740_v59, %v1739_v56 }
 0x447   :  { %2117 = vrcp.f32 %v1535_v58 }
 0x448   :  { %v2108_v63 = vpop.eup %2107  ;;  %v1515_v14 = vmul.f32 1.442695, %v1491_v52  ;;  %v1450_v21 = vadd.f32 %v1741_v3, %v2715_v57  ;;  %v1742_v0 = vpop.f32.mrb[84].mxu0 }
 0x449   :  { %v2110_v6 = vpop.eup %2109  ;;  %v1536_v42 = vadd.f32 1.0, %v2108_v63  ;;  %v1743_v34 = vpop.f32.mrb[85].mxu0 }
 0x44a   :  { %1565 = vst [vmem:[#allocation11 + $0x10] sm:$0xff] %v2110_v6  ;;  %2119 = vpow2.f32 %v1515_v14  ;;  %v1492_v44 = vsub.f32 0.0, %v1450_v21  ;;  %v1744_v26 = vadd.f32 %v1743_v34, %v1742_v0 }
 0x44b   :  { %2121 = vrcp.f32 %v1536_v42 }
 0x44c   :  { %v2112_v2 = vpop.eup %2111  ;;  %v1517_v60 = vmul.f32 1.442695, %v1492_v44  ;;  %v1455_v4 = vadd.f32 %v1744_v26, %v2715_v57  ;;  %v1745_v54 = vpop.f32.mrb[86].mxu0 }
 0x44d   :  { %v2114_v5 = vpop.eup %2113  ;;  %v1537_v18 = vadd.f32 1.0, %v2112_v2  ;;  %v1746_v51 = vpop.f32.mrb[87].mxu0 }
 0x44e   :  { %1566 = vst [vmem:[#allocation11 + $0x18] sm:$0xff] %v2114_v5  ;;  %2123 = vpow2.f32 %v1517_v60  ;;  %v1493_v12 = vsub.f32 0.0, %v1455_v4  ;;  %v1747_v45 = vadd.f32 %v1746_v51, %v1745_v54 }
 0x44f   :  { %2125 = vrcp.f32 %v1537_v18 }
 0x450   :  { %v2116_v39 = vpop.eup %2115  ;;  %v1519_v7 = vmul.f32 1.442695, %v1493_v12  ;;  %v1460_v35 = vadd.f32 %v1747_v45, %v2715_v57  ;;  %v1748_v11 = vpop.f32.mrb[88].mxu0 }
 0x451   :  { %v2118_v15 = vpop.eup %2117  ;;  %v1538_v47 = vadd.f32 1.0, %v2116_v39  ;;  %v1749_v49 = vpop.f32.mrb[89].mxu0 }
 0x452   :  { %1567 = vst [vmem:[#allocation11 + $0x20] sm:$0xff] %v2118_v15  ;;  %2127 = vpow2.f32 %v1519_v7  ;;  %v1494_v30 = vsub.f32 0.0, %v1460_v35  ;;  %v1750_v37 = vadd.f32 %v1749_v49, %v1748_v11 }
 0x453   :  { %2129 = vrcp.f32 %v1538_v47 }
 0x454   :  { %v2120_v13 = vpop.eup %2119  ;;  %v1521_v16 = vmul.f32 1.442695, %v1494_v30  ;;  %v1465_v10 = vadd.f32 %v1750_v37, %v2715_v57  ;;  %v1751_v17 = vpop.f32.mrb[90].mxu0 }
 0x455   :  { %v2122_v1 = vpop.eup %2121  ;;  %v1539_v20 = vadd.f32 1.0, %v2120_v13  ;;  %v1752_v33 = vpop.f32.mrb[91].mxu0 }
 0x456   :  { %1568 = vst [vmem:[#allocation11 + $0x28] sm:$0xff] %v2122_v1  ;;  %2131 = vpow2.f32 %v1521_v16  ;;  %v1495_v48 = vsub.f32 0.0, %v1465_v10  ;;  %v1753_v41 = vadd.f32 %v1752_v33, %v1751_v17 }
 0x457   :  { %2133 = vrcp.f32 %v1539_v20 }
 0x458   :  { %v2124_v43 = vpop.eup %2123  ;;  %v1523_v23 = vmul.f32 1.442695, %v1495_v48  ;;  %v1470_v24 = vadd.f32 %v1753_v41, %v2715_v57  ;;  %v1754_v25 = vpop.f32.mrb[92].mxu0 }
 0x459   :  { %v2126_v61 = vpop.eup %2125  ;;  %v1540_v27 = vadd.f32 1.0, %v2124_v43  ;;  %v1755_v50 = vpop.f32.mrb[93].mxu0 }
 0x45a   :  { %1569 = vst [vmem:[#allocation11 + $0x30] sm:$0xff] %v2126_v61  ;;  %2135 = vpow2.f32 %v1523_v23  ;;  %v1496_v28 = vsub.f32 0.0, %v1470_v24  ;;  %v1756_v19 = vadd.f32 %v1755_v50, %v1754_v25 }
 0x45b   :  { %2137 = vrcp.f32 %v1540_v27 }
 0x45c   :  { %v2128_v29 = vpop.eup %2127  ;;  %v1525_v9 = vmul.f32 1.442695, %v1496_v28  ;;  %v1475_v36 = vadd.f32 %v1756_v19, %v2715_v57  ;;  %v1757_v40 = vpop.f32.mrb[94].mxu0 }
 0x45d   :  { %v2130_v38 = vpop.eup %2129  ;;  %v1541_v31 = vadd.f32 1.0, %v2128_v29  ;;  %v1758_v53 = vpop.f32.mrb[95].mxu0 }
 0x45e   :  { %1570 = vst [vmem:[#allocation11 + $0x38] sm:$0xff] %v2130_v38  ;;  %2139 = vpow2.f32 %v1525_v9  ;;  %v1497_v8 = vsub.f32 0.0, %v1475_v36  ;;  %v1759_v46 = vadd.f32 %v1758_v53, %v1757_v40 }
 0x45f   :  { %2141 = vrcp.f32 %v1541_v31 }
 0x460   :  { %v2132_v62 = vpop.eup %2131  ;;  %v1527_v55 = vmul.f32 1.442695, %v1497_v8  ;;  %v1480_v32 = vadd.f32 %v1759_v46, %v2715_v57 }
 0x461   :  { %v2134_v56 = vpop.eup %2133  ;;  %v1542_v22 = vadd.f32 1.0, %v2132_v62 }
 0x462   :  { %1571 = vst [vmem:[#allocation11 + $0x40] sm:$0xff] %v2134_v56  ;;  %2143 = vpow2.f32 %v1527_v55  ;;  %v1498_v58 = vsub.f32 0.0, %v1480_v32 }
 0x463   :  { %2145 = vrcp.f32 %v1542_v22 }
 0x464   :  { %v2136_v59 = vpop.eup %2135  ;;  %v1529_v52 = vmul.f32 1.442695, %v1498_v58 }
 0x465   :  { %v2138_v3 = vpop.eup %2137  ;;  %v1543_v63 = vadd.f32 1.0, %v2136_v59 }
 0x466   :  { %1572 = vst [vmem:[#allocation11 + $0x48] sm:$0xff] %v2138_v3  ;;  %2147 = vpow2.f32 %v1529_v52 }
 0x467   :  { %2149 = vrcp.f32 %v1543_v63 }
 0x468   :  { %v2140_v14 = vpop.eup %2139 }
 0x469   :  { %v2142_v21 = vpop.eup %2141  ;;  %v1544_v0 = vadd.f32 1.0, %v2140_v14 }
 0x46a   :  { %1573 = vst [vmem:[#allocation11 + $0x50] sm:$0xff] %v2142_v21 }
 0x46b   :  { %2151 = vrcp.f32 %v1544_v0 }
 0x46c   :  { %v2144_v6 = vpop.eup %2143 }
 0x46d   :  { %v2146_v57 = vpop.eup %2145  ;;  %v1545_v42 = vadd.f32 1.0, %v2144_v6 }
 0x46e   :  { %1574 = vst [vmem:[#allocation11 + $0x58] sm:$0xff] %v2146_v57 }
 0x46f   :  { %2153 = vrcp.f32 %v1545_v42 }
 0x470   :  { %v2148_v34 = vpop.eup %2147 }
 0x471   :  { %v2150_v44 = vpop.eup %2149  ;;  %v1546_v26 = vadd.f32 1.0, %v2148_v34 }
 0x472   :  { %1575 = vst [vmem:[#allocation11 + $0x60] sm:$0xff] %v2150_v44 }
 0x473   :  { %2155 = vrcp.f32 %v1546_v26 }
 0x475   :  { %v2152_v2 = vpop.eup %2151 }
 0x476   :  { %1576 = vst [vmem:[#allocation11 + $0x68] sm:$0xff] %v2152_v2 }
 0x479   :  { %v2154_v60 = vpop.eup %2153 }
 0x47a   :  { %1577 = vst [vmem:[#allocation11 + $0x70] sm:$0xff] %v2154_v60 }
 0x47d   :  { %v2156_v4 = vpop.eup %2155 }
 0x47e   :  { %1578 = vst [vmem:[#allocation11 + $0x78] sm:$0xff] %v2156_v4 }
 0x47f   :  { %2278 = shalt.err (!%p2275_p2)
}
 0x480   :  { %s2279_s26 = scalar_lea.hbm %s2757_s9, 2048 }
 0x481   :  { %p2280_p3 = scmp.ne.s32.totalorder %s2757_s9, %s2279_s26  ;;  %p2283_p4 = scmp.lt.u32.totalorder %s2279_s26, %s2757_s9 }
 0x483   :  { %p2285_p5 = pnand %p2283_p4, %p2280_p3 }
 0x485   :  { %2288 = shalt.err (!%p2285_p5)
}
 0x486   :  { %1590 = dma.vmem_to_hbm [thread:$0]  %s1585_s16, 2048, %s2757_s9, [#allocation4], %s2298_s19, %s2298_s19, %s2299_s20  }
 0x487   :  { %2295 = dma.done.wait [#allocation4], 2048  }
 0x488   :  { %2296 = vsyncadd [#allocation4], 4294965248 }
 0x489   :  { %1594 = vsyncpa [#allocation3], 1 }
 0x48a   :  { %1595 = vsyncpa [#allocation6], 1 }
 0x48b   :  { %1596 = vsyncpa [#allocation9], 1 }
 0x48c   :  { %1597 = vsyncpa [#allocation4], 1 }

</bundles_post_ra>
